<compile_context>
chip_gen: v6e
topology: v6e:2x2x1
jax: 0.10.0
libtpu: 0.0.40
codegen_flags: <defaults>
</compile_context>

<pallas_src>
import math
import functools

import jax
import jax.numpy as jnp
from jax.experimental import pallas as pl
from jax.experimental.pallas import tpu as pltpu


# ----------------------------------------------------------------------------- config
_VMEM_LIMIT = 48 * 1024 * 1024   # <= 64 MiB so it is safe on v7x as well as v5e/v6e


def _cparams(*sem):
    return pltpu.CompilerParams(dimension_semantics=sem, vmem_limit_bytes=_VMEM_LIMIT)


def _pick_tile(n, target):
    """Largest divisor of n that is <= target and a multiple of 8 (else n itself)."""
    if n <= target:
        return n
    for t in range(target, 0, -1):
        if n % t == 0 and t % 8 == 0:
            return t
    return n


# ----------------------------------------------------------------------------- math helpers (f32)
def _gelu(x):
    # TODO(synk): PyTorch F.gelu default is the exact erf-based GELU; tanh approximation
    # is used here for a safe EUP lowering on TPU.
    return 0.5 * x * (1.0 + jnp.tanh(0.7978845608028654 * (x + 0.044715 * x * x * x)))


def _ln(x, g, b, eps=1e-5):
    mu = jnp.mean(x, axis=-1, keepdims=True)
    var = jnp.mean((x - mu) ** 2, axis=-1, keepdims=True)
    return (x - mu) * jax.lax.rsqrt(var + eps) * g + b


def sinusoids(length, channels, max_timescale=10000.0):
    """Whisper-style sinusoidal positional embedding (plain JAX glue, computed once)."""
    assert channels % 2 == 0
    log_ts_inc = math.log(max_timescale) / (channels // 2 - 1)
    inv_ts = jnp.exp(-log_ts_inc * jnp.arange(channels // 2, dtype=jnp.float32))
    scaled = jnp.arange(length, dtype=jnp.float32)[:, None] * inv_ts[None, :]
    return jnp.concatenate([jnp.sin(scaled), jnp.cos(scaled)], axis=1)


# ----------------------------------------------------------------------------- kernels
def _conv_gelu_kernel(x_ref, w_ref, b_ref, o_ref):
    # x: (tt, K*Cin) f32 | w: (K*Cin, Cout) bf16 | b: (1, Cout) f32
    x = x_ref[...].astype(jnp.bfloat16)
    y = jnp.dot(x, w_ref[...], preferred_element_type=jnp.float32) + b_ref[...]
    o_ref[...] = _gelu(y).astype(o_ref.dtype)


def _conv_gelu_pos_kernel(x_ref, w_ref, b_ref, pos_ref, o_ref):
    # Same as above, with the sinusoidal positional embedding add fused in.
    x = x_ref[...].astype(jnp.bfloat16)
    y = jnp.dot(x, w_ref[...], preferred_element_type=jnp.float32) + b_ref[...]
    o_ref[...] = (_gelu(y) + pos_ref[...]).astype(o_ref.dtype)


def _ln_matmul_kernel(x_ref, g_ref, b_ref, w_ref, wb_ref, o_ref, *, activation):
    # Row-tiled: LayerNorm (f32) -> bf16 matmul (f32 acc) -> bias (+ optional GELU).
    x = x_ref[...].astype(jnp.float32)                       # (tr, D)
    h = _ln(x, g_ref[...], b_ref[...])
    y = jnp.dot(h.astype(jnp.bfloat16), w_ref[...],
                preferred_element_type=jnp.float32) + wb_ref[...]
    if activation == "gelu":
        y = _gelu(y)
    o_ref[...] = y.astype(o_ref.dtype)


def _matmul_residual_kernel(x_ref, res_ref, w_ref, b_ref, o_ref):
    # Row-tiled: residual + x @ w + b (bf16 operands, f32 accumulation).
    y = jnp.dot(x_ref[...].astype(jnp.bfloat16), w_ref[...],
                preferred_element_type=jnp.float32)
    o_ref[...] = (res_ref[...].astype(jnp.float32) + y + b_ref[...]).astype(o_ref.dtype)


def _layernorm_kernel(x_ref, g_ref, b_ref, o_ref):
    o_ref[...] = _ln(x_ref[...].astype(jnp.float32), g_ref[...], b_ref[...]).astype(o_ref.dtype)


def _flash_attn_kernel(q_ref, k_ref, v_ref, o_ref, m_sc, l_sc, acc_sc):
    # Grid: (B, H, q-tiles, kv-tiles); kv-tile is the (arbitrary) reduction axis.
    ki = pl.program_id(3)

    @pl.when(ki == 0)
    def _():
        m_sc[...] = jnp.full_like(m_sc, -jnp.inf)
        l_sc[...] = jnp.zeros_like(l_sc)
        acc_sc[...] = jnp.zeros_like(acc_sc)

    q = q_ref[...]                                            # (tq, dh) bf16, scale pre-folded
    k = k_ref[...]                                            # (tk, dh) bf16
    s = jax.lax.dot_general(q, k, (((1,), (1,)), ((), ())),
                            preferred_element_type=jnp.float32)   # (tq, tk) f32

    m_prev = m_sc[...]
    m_new = jnp.maximum(m_prev, s.max(axis=-1, keepdims=True))
    alpha = jnp.exp(m_prev - m_new)
    p = jnp.exp(s - m_new)
    l_sc[...] = alpha * l_sc[...] + p.sum(axis=-1, keepdims=True)
    acc_sc[...] = alpha * acc_sc[...] + jnp.dot(p.astype(jnp.bfloat16), v_ref[...],
                                                preferred_element_type=jnp.float32)
    m_sc[...] = m_new

    @pl.when(ki == pl.num_programs(3) - 1)
    def _():
        o_ref[...] = (acc_sc[...] * pl.reciprocal(l_sc[...], approx=True)).astype(o_ref.dtype)


# ----------------------------------------------------------------------------- pallas_call wrappers
def conv1d_gelu(x, w_flat, b, *, stride, pad, K, pos=None):
    """Conv1d (pre-flattened bf16 weight (K*Cin, Cout)) + GELU, time-tiled, optional pos add."""
    B, T, Cin = x.shape
    KC, Cout = w_flat.shape
    xp = jnp.pad(x, ((0, 0), (pad, pad), (0, 0)))
    T_out = (T + 2 * pad - K) // stride + 1
    cols = [xp[:, k:k + stride * T_out:stride, :] for k in range(K)]
    x_cols = jnp.concatenate(cols, axis=-1)                     # (B, T_out, K*Cin)

    tt = _pick_tile(T_out, 256)
    in_specs = [pl.BlockSpec((None, tt, KC), lambda bi, ti: (bi, ti, 0)),
                pl.BlockSpec((KC, Cout), lambda bi, ti: (0, 0)),
                pl.BlockSpec((1, Cout), lambda bi, ti: (0, 0))]
    args = [x_cols, w_flat, b.reshape(1, Cout)]
    if pos is not None:
        in_specs.append(pl.BlockSpec((tt, Cout), lambda bi, ti: (ti, 0)))
        args.append(pos)
        kernel = _conv_gelu_pos_kernel
    else:
        kernel = _conv_gelu_kernel

    return pl.pallas_call(
        kernel,
        grid=(B, T_out // tt),
        out_shape=jax.ShapeDtypeStruct((B, T_out, Cout), x.dtype),
        in_specs=in_specs,
        out_specs=pl.BlockSpec((None, tt, Cout), lambda bi, ti: (bi, ti, 0)),
        compiler_params=_cparams("parallel", "parallel"),
    )(*args)


def ln_matmul(x2d, g, b, w, wb, *, activation=None, out_dtype=None):
    R, D = x2d.shape
    N = w.shape[1]
    tr = _pick_tile(R, 256)
    out_dtype = out_dtype or x2d.dtype
    kernel = functools.partial(_ln_matmul_kernel, activation=activation)
    return pl.pallas_call(
        kernel,
        grid=(R // tr,),
        out_shape=jax.ShapeDtypeStruct((R, N), out_dtype),
        in_specs=[pl.BlockSpec((tr, D), lambda i: (i, 0)),
                  pl.BlockSpec((1, D), lambda i: (0, 0)),
                  pl.BlockSpec((1, D), lambda i: (0, 0)),
                  pl.BlockSpec((D, N), lambda i: (0, 0)),
                  pl.BlockSpec((1, N), lambda i: (0, 0))],
        out_specs=pl.BlockSpec((tr, N), lambda i: (i, 0)),
        compiler_params=_cparams("parallel"),
    )(x2d, g.reshape(1, D), b.reshape(1, D), w, wb.reshape(1, N))


def matmul_residual(x2d, res2d, w, b):
    R, Kd = x2d.shape
    N = w.shape[1]
    tr = _pick_tile(R, 256)
    return pl.pallas_call(
        _matmul_residual_kernel,
        grid=(R // tr,),
        out_shape=jax.ShapeDtypeStruct((R, N), res2d.dtype),
        in_specs=[pl.BlockSpec((tr, Kd), lambda i: (i, 0)),
                  pl.BlockSpec((tr, N), lambda i: (i, 0)),
                  pl.BlockSpec((Kd, N), lambda i: (0, 0)),
                  pl.BlockSpec((1, N), lambda i: (0, 0))],
        out_specs=pl.BlockSpec((tr, N), lambda i: (i, 0)),
        compiler_params=_cparams("parallel"),
    )(x2d, res2d, w, b.reshape(1, N))


def flash_attention(q, k, v, *, out_dtype=jnp.bfloat16):
    """q, k, v: (B, H, T, dh) bf16 (1/sqrt(dh) already folded into the q projection)."""
    B, H, T, dh = q.shape
    tq = _pick_tile(T, 128)
    tk = _pick_tile(T, 128)
    q_spec = pl.BlockSpec((None, None, tq, dh), lambda b, h, qi, ki: (b, h, qi, 0))
    kv_spec = pl.BlockSpec((None, None, tk, dh), lambda b, h, qi, ki: (b, h, ki, 0))
    o_spec = pl.BlockSpec((None, None, tq, dh), lambda b, h, qi, ki: (b, h, qi, 0))
    return pl.pallas_call(
        _flash_attn_kernel,
        grid=(B, H, T // tq, T // tk),
        out_shape=jax.ShapeDtypeStruct((B, H, T, dh), out_dtype),
        in_specs=[q_spec, kv_spec, kv_spec],
        out_specs=o_spec,
        scratch_shapes=[pltpu.VMEM((tq, 1), jnp.float32),
                        pltpu.VMEM((tq, 1), jnp.float32),
                        pltpu.VMEM((tq, dh), jnp.float32)],
        compiler_params=_cparams("parallel", "parallel", "parallel", "arbitrary"),
    )(q, k, v)


def layer_norm(x, g, b):
    B, T, D = x.shape
    R = B * T
    tr = _pick_tile(R, 512)
    out = pl.pallas_call(
        _layernorm_kernel,
        grid=(R // tr,),
        out_shape=jax.ShapeDtypeStruct((R, D), x.dtype),
        in_specs=[pl.BlockSpec((tr, D), lambda i: (i, 0)),
                  pl.BlockSpec((1, D), lambda i: (0, 0)),
                  pl.BlockSpec((1, D), lambda i: (0, 0))],
        out_specs=pl.BlockSpec((tr, D), lambda i: (i, 0)),
        compiler_params=_cparams("parallel"),
    )(x.reshape(R, D), g.reshape(1, D), b.reshape(1, D))
    return out.reshape(B, T, D)


# ----------------------------------------------------------------------------- encoder layer
def encoder_layer(x, p, num_heads):
    B, T, D = x.shape
    dh = D // num_heads
    x2d = x.reshape(B * T, D)

    # Pre-LN fused QKV projection (scale folded into wq); bf16 output feeds attention.
    qkv = ln_matmul(x2d, p['ln1_g'], p['ln1_b'], p['wqkv'], p['bqkv'],
                    activation=None, out_dtype=jnp.bfloat16)          # (B*T, 3D)
    qkv = qkv.reshape(B, T, 3, num_heads, dh)
    q = jnp.transpose(qkv[:, :, 0], (0, 2, 1, 3))                     # (B, H, T, dh)
    k = jnp.transpose(qkv[:, :, 1], (0, 2, 1, 3))
    v = jnp.transpose(qkv[:, :, 2], (0, 2, 1, 3))

    attn = flash_attention(q, k, v)                                   # (B, H, T, dh) bf16
    attn2d = jnp.transpose(attn, (0, 2, 1, 3)).reshape(B * T, D)

    # Attention out-projection fused with the residual add.
    x2d = matmul_residual(attn2d, x2d, p['wo'], p['bo'])              # (B*T, D) f32

    # MLP: LN2 + fc1 + GELU, then fc2 fused with the residual add.
    h = ln_matmul(x2d, p['ln2_g'], p['ln2_b'], p['w1'], p['b1'],
                  activation='gelu', out_dtype=jnp.bfloat16)          # (B*T, d_ff)
    x2d = matmul_residual(h, x2d, p['w2'], p['b2'])                   # (B*T, D) f32
    return x2d.reshape(B, T, D)


# ----------------------------------------------------------------------------- forward
def speech_tower_forward(speeches, params, num_heads):
    """Mirrors SpeechTower.forward: list -> per-element encode, tensor -> batched encode,
    output cast back to input dtype (`.to(speech.dtype)`)."""
    if isinstance(speeches, (list, tuple)):
        return [speech_tower_forward(s, params, num_heads) for s in speeches]

    # speeches: (B, n_mels, T) — PyTorch NCL conv input; transpose to channels-last.
    x = jnp.transpose(speeches, (0, 2, 1)).astype(jnp.float32)        # (B, T, n_mels)
    x = conv1d_gelu(x, params['conv1_wf'], params['conv1_b'], stride=1, pad=1, K=3)
    B, T1, D = x.shape
    T2 = (T1 + 2 - 3) // 2 + 1
    pos = sinusoids(T2, D)                                            # fused into conv2 kernel
    x = conv1d_gelu(x, params['conv2_wf'], params['conv2_b'], stride=2, pad=1, K=3, pos=pos)
    for lp in params['layers']:
        x = encoder_layer(x, lp, num_heads)
    x = layer_norm(x, params['ln_post_g'], params['ln_post_b'])
    return x.astype(speeches.dtype)                                   # last_hidden_state.to(dtype)


# ----------------------------------------------------------------------------- params
def init_params(key, n_mels, d_model, n_layers, d_ff):
    """Synthetic Whisper-style encoder weights in PyTorch layout (f32)."""
    keys = jax.random.split(key, 4 + n_layers)
    nrm = lambda k, shape: 0.02 * jax.random.normal(k, shape, dtype=jnp.float32)
    params = {
        'conv1_w': nrm(keys[0], (d_model, n_mels, 3)),
        'conv1_b': nrm(keys[1], (d_model,)),
        'conv2_w': nrm(keys[2], (d_model, d_model, 3)),
        'conv2_b': nrm(keys[3], (d_model,)),
        'ln_post_g': jnp.ones((d_model,), jnp.float32),
        'ln_post_b': jnp.zeros((d_model,), jnp.float32),
        'layers': [],
    }
    for i in range(n_layers):
        lk = jax.random.split(keys[4 + i], 11)
        params['layers'].append(dict(
            ln1_g=jnp.ones((d_model,), jnp.float32), ln1_b=jnp.zeros((d_model,), jnp.float32),
            wq=nrm(lk[0], (d_model, d_model)), bq=nrm(lk[1], (d_model,)),
            wk=nrm(lk[2], (d_model, d_model)), bk=jnp.zeros((d_model,), jnp.float32),  # k_proj: no bias
            wv=nrm(lk[3], (d_model, d_model)), bv=nrm(lk[4], (d_model,)),
            wo=nrm(lk[5], (d_model, d_model)), bo=nrm(lk[6], (d_model,)),
            ln2_g=jnp.ones((d_model,), jnp.float32), ln2_b=jnp.zeros((d_model,), jnp.float32),
            w1=nrm(lk[7], (d_model, d_ff)), b1=nrm(lk[8], (d_ff,)),
            w2=nrm(lk[9], (d_ff, d_model)), b2=nrm(lk[10], (d_model,)),
        ))
    return params


def prepare_params(params, num_heads):
    """One-time transform: flatten conv weights, fuse QKV + fold 1/sqrt(dh) into wq/bq,
    cast all matmul weights to bf16 (MXU operands). Biases/LN params stay f32."""
    d_model = params['conv1_w'].shape[0]
    dh = d_model // num_heads
    scale = 1.0 / math.sqrt(dh)

    def conv_flat(w):
        Cout, Cin, K = w.shape
        return jnp.transpose(w, (2, 1, 0)).reshape(K * Cin, Cout).astype(jnp.bfloat16)

    out = {
        'conv1_wf': conv_flat(params['conv1_w']), 'conv1_b': params['conv1_b'],
        'conv2_wf': conv_flat(params['conv2_w']), 'conv2_b': params['conv2_b'],
        'ln_post_g': params['ln_post_g'], 'ln_post_b': params['ln_post_b'],
        'layers': [],
    }
    for lp in params['layers']:
        wqkv = jnp.concatenate([lp['wq'] * scale, lp['wk'], lp['wv']], axis=1).astype(jnp.bfloat16)
        bqkv = jnp.concatenate([lp['bq'] * scale, lp['bk'], lp['bv']], axis=0)
        out['layers'].append(dict(
            ln1_g=lp['ln1_g'], ln1_b=lp['ln1_b'],
            wqkv=wqkv, bqkv=bqkv,
            wo=lp['wo'].astype(jnp.bfloat16), bo=lp['bo'],
            ln2_g=lp['ln2_g'], ln2_b=lp['ln2_b'],
            w1=lp['w1'].astype(jnp.bfloat16), b1=lp['b1'],
            w2=lp['w2'].astype(jnp.bfloat16), b2=lp['b2'],
        ))
    return out


# ----------------------------------------------------------------------------- main
if __name__ == "__main__":
    key = jax.random.PRNGKey(0)
    # Small but lane-dense toy shapes (D, d_ff multiples of 128).
    B, n_mels, T = 2, 8, 32
    d_model, n_heads, n_layers, d_ff = 128, 2, 2, 256

    pkey, xkey = jax.random.split(key)
    params = prepare_params(init_params(pkey, n_mels, d_model, n_layers, d_ff), n_heads)
    speeches = jax.random.normal(xkey, (B, n_mels, T), dtype=jnp.float32)

    fwd = jax.jit(functools.partial(speech_tower_forward, num_heads=n_heads))
    out = jax.block_until_ready(fwd(speeches, params))

    assert out.shape == (B, T // 2, d_model), out.shape
    assert out.dtype == speeches.dtype
    assert bool(jnp.all(jnp.isfinite(out)))
    print("KERNEL_OK")
</pallas_src>

<mosaic_0001>
module attributes {stable_mosaic.version = 11 : i64} {
  func.func @_conv_gelu_kernel(%arg0: i32, %arg1: i32, %arg2: memref<1x32x24xf32, #tpu.memory_space<vmem>>, %arg3: memref<24x128xbf16, #tpu.memory_space<vmem>>, %arg4: memref<1x128xf32, #tpu.memory_space<vmem>>, %arg5: memref<1x32x128xf32, #tpu.memory_space<vmem>>) attributes {dimension_semantics = [#tpu.dimension_semantics<parallel>, #tpu.dimension_semantics<parallel>], iteration_bounds = array<i64: 2, 1>, scalar_prefetch = 0 : i64, scratch_operands = 0 : i64, tpu.core_type = #tpu.core_type<tc>, window_params = [{transform_indices = @transform_0, window_bounds = array<i64: 1, 32, 24>}, {pipeline_mode = #tpu.pipeline_mode<synchronous>, transform_indices = @transform_1, window_bounds = array<i64: 24, 128>}, {pipeline_mode = #tpu.pipeline_mode<synchronous>, transform_indices = @transform_2, window_bounds = array<i64: 1, 128>}, {transform_indices = @transform_3, window_bounds = array<i64: 1, 32, 128>}]} {
    %c0 = arith.constant 0 : index
    %c0_0 = arith.constant 0 : index
    %c0_1 = arith.constant 0 : index
    %0 = vector.load %arg2[%c0, %c0_0, %c0_1] : memref<1x32x24xf32, #tpu.memory_space<vmem>>, vector<1x32x24xf32>
    %1 = vector.shape_cast %0 : vector<1x32x24xf32> to vector<32x24xf32>
    %2 = arith.truncf %1 : vector<32x24xf32> to vector<32x24xbf16>
    %c0_2 = arith.constant 0 : index
    %c0_3 = arith.constant 0 : index
    %3 = vector.load %arg3[%c0_2, %c0_3] : memref<24x128xbf16, #tpu.memory_space<vmem>>, vector<24x128xbf16>
    %cst = arith.constant dense<0.000000e+00> : vector<32x128xf32>
    %4 = tpu.matmul %2, %3, %cst {dimension_numbers = #tpu.dot_dimension_numbers<[1], [0], [0], [1], [0, 0, 1, 1], [], []>} : vector<32x24xbf16>, vector<24x128xbf16>, vector<32x128xf32> -> vector<32x128xf32>
    %c0_4 = arith.constant 0 : index
    %c0_5 = arith.constant 0 : index
    %5 = vector.load %arg4[%c0_4, %c0_5] : memref<1x128xf32, #tpu.memory_space<vmem>>, vector<1x128xf32>
    %6 = vector.broadcast %5 : vector<1x128xf32> to vector<32x128xf32>
    %7 = arith.addf %4, %6 : vector<32x128xf32>
    %cst_6 = arith.constant 5.000000e-01 : f32
    %8 = vector.broadcast %cst_6 : f32 to vector<32x128xf32>
    %9 = arith.mulf %8, %7 : vector<32x128xf32>
    %cst_7 = arith.constant 4.471500e-02 : f32
    %10 = vector.broadcast %cst_7 : f32 to vector<32x128xf32>
    %11 = arith.mulf %10, %7 : vector<32x128xf32>
    %12 = arith.mulf %11, %7 : vector<32x128xf32>
    %13 = arith.mulf %12, %7 : vector<32x128xf32>
    %14 = arith.addf %7, %13 : vector<32x128xf32>
    %cst_8 = arith.constant 0.797884583 : f32
    %15 = vector.broadcast %cst_8 : f32 to vector<32x128xf32>
    %16 = arith.mulf %15, %14 : vector<32x128xf32>
    %17 = math.tanh %16 : vector<32x128xf32>
    %cst_9 = arith.constant 1.000000e+00 : f32
    %18 = vector.broadcast %cst_9 : f32 to vector<32x128xf32>
    %19 = arith.addf %18, %17 : vector<32x128xf32>
    %20 = arith.mulf %9, %19 : vector<32x128xf32>
    %c0_10 = arith.constant 0 : index
    %c0_11 = arith.constant 0 : index
    %c0_12 = arith.constant 0 : index
    %21 = vector.load %arg5[%c0_10, %c0_11, %c0_12] : memref<1x32x128xf32, #tpu.memory_space<vmem>>, vector<1x32x128xf32>
    %22 = vector.shape_cast %21 : vector<1x32x128xf32> to vector<32x128xf32>
    %23 = vector.shape_cast %20 : vector<32x128xf32> to vector<1x32x128xf32>
    tpu.vector_store %arg5[%c0_10, %c0_11, %c0_12], %23 {strides = array<i32>} : memref<1x32x128xf32, #tpu.memory_space<vmem>>, vector<1x32x128xf32>,
    return
  }
  func.func @transform_0(%arg0: i32, %arg1: i32) -> (i32, i32, i32) {
    %c0_i32 = arith.constant 0 : i32
    %c0_i32_0 = arith.constant 0 : i32
    return %arg0, %arg1, %c0_i32 : i32, i32, i32
  }
  func.func @transform_1(%arg0: i32, %arg1: i32) -> (i32, i32) {
    %c0_i32 = arith.constant 0 : i32
    %c0_i32_0 = arith.constant 0 : i32
    %c0_i32_1 = arith.constant 0 : i32
    return %c0_i32, %c0_i32_0 : i32, i32
  }
  func.func @transform_2(%arg0: i32, %arg1: i32) -> (i32, i32) {
    %c0_i32 = arith.constant 0 : i32
    %c0_i32_0 = arith.constant 0 : i32
    %c0_i32_1 = arith.constant 0 : i32
    return %c0_i32, %c0_i32_0 : i32, i32
  }
  func.func @transform_3(%arg0: i32, %arg1: i32) -> (i32, i32, i32) {
    %c0_i32 = arith.constant 0 : i32
    %c0_i32_0 = arith.constant 0 : i32
    return %arg0, %arg1, %c0_i32 : i32, i32, i32
  }
}

module attributes {stable_mosaic.version = 11 : i64} {
  func.func @_conv_gelu_pos_kernel(%arg0: i32, %arg1: i32, %arg2: memref<1x16x384xf32, #tpu.memory_space<vmem>>, %arg3: memref<384x128xbf16, #tpu.memory_space<vmem>>, %arg4: memref<1x128xf32, #tpu.memory_space<vmem>>, %arg5: memref<16x128xf32, #tpu.memory_space<vmem>>, %arg6: memref<1x16x128xf32, #tpu.memory_space<vmem>>) attributes {dimension_semantics = [#tpu.dimension_semantics<parallel>, #tpu.dimension_semantics<parallel>], iteration_bounds = array<i64: 2, 1>, scalar_prefetch = 0 : i64, scratch_operands = 0 : i64, tpu.core_type = #tpu.core_type<tc>, window_params = [{transform_indices = @transform_0, window_bounds = array<i64: 1, 16, 384>}, {pipeline_mode = #tpu.pipeline_mode<synchronous>, transform_indices = @transform_1, window_bounds = array<i64: 384, 128>}, {pipeline_mode = #tpu.pipeline_mode<synchronous>, transform_indices = @transform_2, window_bounds = array<i64: 1, 128>}, {transform_indices = @transform_3, window_bounds = array<i64: 16, 128>}, {transform_indices = @transform_4, window_bounds = array<i64: 1, 16, 128>}]} {
    %c0 = arith.constant 0 : index
    %c0_0 = arith.constant 0 : index
    %c0_1 = arith.constant 0 : index
    %0 = vector.load %arg2[%c0, %c0_0, %c0_1] : memref<1x16x384xf32, #tpu.memory_space<vmem>>, vector<1x16x384xf32>
    %1 = vector.shape_cast %0 : vector<1x16x384xf32> to vector<16x384xf32>
    %2 = arith.truncf %1 : vector<16x384xf32> to vector<16x384xbf16>
    %c0_2 = arith.constant 0 : index
    %c0_3 = arith.constant 0 : index
    %3 = vector.load %arg3[%c0_2, %c0_3] : memref<384x128xbf16, #tpu.memory_space<vmem>>, vector<384x128xbf16>
    %cst = arith.constant dense<0.000000e+00> : vector<16x128xf32>
    %4 = tpu.matmul %2, %3, %cst {dimension_numbers = #tpu.dot_dimension_numbers<[1], [0], [0], [1], [0, 0, 1, 1], [], []>} : vector<16x384xbf16>, vector<384x128xbf16>, vector<16x128xf32> -> vector<16x128xf32>
    %c0_4 = arith.constant 0 : index
    %c0_5 = arith.constant 0 : index
    %5 = vector.load %arg4[%c0_4, %c0_5] : memref<1x128xf32, #tpu.memory_space<vmem>>, vector<1x128xf32>
    %6 = vector.broadcast %5 : vector<1x128xf32> to vector<16x128xf32>
    %7 = arith.addf %4, %6 : vector<16x128xf32>
    %cst_6 = arith.constant 5.000000e-01 : f32
    %8 = vector.broadcast %cst_6 : f32 to vector<16x128xf32>
    %9 = arith.mulf %8, %7 : vector<16x128xf32>
    %cst_7 = arith.constant 4.471500e-02 : f32
    %10 = vector.broadcast %cst_7 : f32 to vector<16x128xf32>
    %11 = arith.mulf %10, %7 : vector<16x128xf32>
    %12 = arith.mulf %11, %7 : vector<16x128xf32>
    %13 = arith.mulf %12, %7 : vector<16x128xf32>
    %14 = arith.addf %7, %13 : vector<16x128xf32>
    %cst_8 = arith.constant 0.797884583 : f32
    %15 = vector.broadcast %cst_8 : f32 to vector<16x128xf32>
    %16 = arith.mulf %15, %14 : vector<16x128xf32>
    %17 = math.tanh %16 : vector<16x128xf32>
    %cst_9 = arith.constant 1.000000e+00 : f32
    %18 = vector.broadcast %cst_9 : f32 to vector<16x128xf32>
    %19 = arith.addf %18, %17 : vector<16x128xf32>
    %20 = arith.mulf %9, %19 : vector<16x128xf32>
    %c0_10 = arith.constant 0 : index
    %c0_11 = arith.constant 0 : index
    %21 = vector.load %arg5[%c0_10, %c0_11] : memref<16x128xf32, #tpu.memory_space<vmem>>, vector<16x128xf32>
    %22 = arith.addf %20, %21 : vector<16x128xf32>
    %c0_12 = arith.constant 0 : index
    %c0_13 = arith.constant 0 : index
    %c0_14 = arith.constant 0 : index
    %23 = vector.load %arg6[%c0_12, %c0_13, %c0_14] : memref<1x16x128xf32, #tpu.memory_space<vmem>>, vector<1x16x128xf32>
    %24 = vector.shape_cast %23 : vector<1x16x128xf32> to vector<16x128xf32>
    %25 = vector.shape_cast %22 : vector<16x128xf32> to vector<1x16x128xf32>
    tpu.vector_store %arg6[%c0_12, %c0_13, %c0_14], %25 {strides = array<i32>} : memref<1x16x128xf32, #tpu.memory_space<vmem>>, vector<1x16x128xf32>,
    return
  }
  func.func @transform_0(%arg0: i32, %arg1: i32) -> (i32, i32, i32) {
    %c0_i32 = arith.constant 0 : i32
    %c0_i32_0 = arith.constant 0 : i32
    return %arg0, %arg1, %c0_i32 : i32, i32, i32
  }
  func.func @transform_1(%arg0: i32, %arg1: i32) -> (i32, i32) {
    %c0_i32 = arith.constant 0 : i32
    %c0_i32_0 = arith.constant 0 : i32
    %c0_i32_1 = arith.constant 0 : i32
    return %c0_i32, %c0_i32_0 : i32, i32
  }
  func.func @transform_2(%arg0: i32, %arg1: i32) -> (i32, i32) {
    %c0_i32 = arith.constant 0 : i32
    %c0_i32_0 = arith.constant 0 : i32
    %c0_i32_1 = arith.constant 0 : i32
    return %c0_i32, %c0_i32_0 : i32, i32
  }
  func.func @transform_3(%arg0: i32, %arg1: i32) -> (i32, i32) {
    %c0_i32 = arith.constant 0 : i32
    %c0_i32_0 = arith.constant 0 : i32
    return %arg1, %c0_i32 : i32, i32
  }
  func.func @transform_4(%arg0: i32, %arg1: i32) -> (i32, i32, i32) {
    %c0_i32 = arith.constant 0 : i32
    %c0_i32_0 = arith.constant 0 : i32
    return %arg0, %arg1, %c0_i32 : i32, i32, i32
  }
}

module attributes {stable_mosaic.version = 11 : i64} {
  func.func @_ln_matmul_kernel(%arg0: i32, %arg1: memref<32x128xf32, #tpu.memory_space<vmem>>, %arg2: memref<1x128xf32, #tpu.memory_space<vmem>>, %arg3: memref<1x128xf32, #tpu.memory_space<vmem>>, %arg4: memref<128x384xbf16, #tpu.memory_space<vmem>>, %arg5: memref<1x384xf32, #tpu.memory_space<vmem>>, %arg6: memref<32x384xbf16, #tpu.memory_space<vmem>>) attributes {dimension_semantics = [#tpu.dimension_semantics<parallel>], iteration_bounds = array<i64: 1>, scalar_prefetch = 0 : i64, scratch_operands = 0 : i64, tpu.core_type = #tpu.core_type<tc>, window_params = [{transform_indices = @transform_0, window_bounds = array<i64: 32, 128>}, {pipeline_mode = #tpu.pipeline_mode<synchronous>, transform_indices = @transform_1, window_bounds = array<i64: 1, 128>}, {pipeline_mode = #tpu.pipeline_mode<synchronous>, transform_indices = @transform_2, window_bounds = array<i64: 1, 128>}, {pipeline_mode = #tpu.pipeline_mode<synchronous>, transform_indices = @transform_3, window_bounds = array<i64: 128, 384>}, {pipeline_mode = #tpu.pipeline_mode<synchronous>, transform_indices = @transform_4, window_bounds = array<i64: 1, 384>}, {transform_indices = @transform_5, window_bounds = array<i64: 32, 384>}]} {
    %c0 = arith.constant 0 : index
    %c0_0 = arith.constant 0 : index
    %0 = vector.load %arg1[%c0, %c0_0] : memref<32x128xf32, #tpu.memory_space<vmem>>, vector<32x128xf32>
    %c0_1 = arith.constant 0 : index
    %c0_2 = arith.constant 0 : index
    %1 = vector.load %arg2[%c0_1, %c0_2] : memref<1x128xf32, #tpu.memory_space<vmem>>, vector<1x128xf32>
    %c0_3 = arith.constant 0 : index
    %c0_4 = arith.constant 0 : index
    %2 = vector.load %arg3[%c0_3, %c0_4] : memref<1x128xf32, #tpu.memory_space<vmem>>, vector<1x128xf32>
    %cst = arith.constant dense<0.000000e+00> : vector<32xf32>
    %3 = vector.multi_reduction <add>, %0, %cst [1] : vector<32x128xf32> to vector<32xf32>
    %4 = vector.shape_cast %3 : vector<32xf32> to vector<32x1xf32>
    %cst_5 = arith.constant 1.280000e+02 : f32
    %5 = vector.broadcast %cst_5 : f32 to vector<32x1xf32>
    %6 = arith.divf %4, %5 : vector<32x1xf32>
    %7 = vector.broadcast %6 : vector<32x1xf32> to vector<32x128xf32>
    %8 = arith.subf %0, %7 : vector<32x128xf32>
    %9 = arith.mulf %8, %8 : vector<32x128xf32>
    %cst_6 = arith.constant dense<0.000000e+00> : vector<32xf32>
    %10 = vector.multi_reduction <add>, %9, %cst_6 [1] : vector<32x128xf32> to vector<32xf32>
    %11 = vector.shape_cast %10 : vector<32xf32> to vector<32x1xf32>
    %cst_7 = arith.constant 1.280000e+02 : f32
    %12 = vector.broadcast %cst_7 : f32 to vector<32x1xf32>
    %13 = arith.divf %11, %12 : vector<32x1xf32>
    %14 = vector.broadcast %6 : vector<32x1xf32> to vector<32x128xf32>
    %15 = arith.subf %0, %14 : vector<32x128xf32>
    %cst_8 = arith.constant 9.99999974E-6 : f32
    %16 = vector.broadcast %cst_8 : f32 to vector<32x1xf32>
    %17 = arith.addf %13, %16 : vector<32x1xf32>
    %18 = math.rsqrt %17 : vector<32x1xf32>
    %19 = vector.broadcast %18 : vector<32x1xf32> to vector<32x128xf32>
    %20 = arith.mulf %15, %19 : vector<32x128xf32>
    %21 = vector.broadcast %1 : vector<1x128xf32> to vector<32x128xf32>
    %22 = arith.mulf %20, %21 : vector<32x128xf32>
    %23 = vector.broadcast %2 : vector<1x128xf32> to vector<32x128xf32>
    %24 = arith.addf %22, %23 : vector<32x128xf32>
    %25 = arith.truncf %24 : vector<32x128xf32> to vector<32x128xbf16>
    %c0_9 = arith.constant 0 : index
    %c0_10 = arith.constant 0 : index
    %26 = vector.load %arg4[%c0_9, %c0_10] : memref<128x384xbf16, #tpu.memory_space<vmem>>, vector<128x384xbf16>
    %cst_11 = arith.constant dense<0.000000e+00> : vector<32x384xf32>
    %27 = tpu.matmul %25, %26, %cst_11 {dimension_numbers = #tpu.dot_dimension_numbers<[1], [0], [0], [1], [0, 0, 1, 1], [], []>} : vector<32x128xbf16>, vector<128x384xbf16>, vector<32x384xf32> -> vector<32x384xf32>
    %c0_12 = arith.constant 0 : index
    %c0_13 = arith.constant 0 : index
    %28 = vector.load %arg5[%c0_12, %c0_13] : memref<1x384xf32, #tpu.memory_space<vmem>>, vector<1x384xf32>
    %29 = vector.broadcast %28 : vector<1x384xf32> to vector<32x384xf32>
    %30 = arith.addf %27, %29 : vector<32x384xf32>
    %31 = arith.truncf %30 : vector<32x384xf32> to vector<32x384xbf16>
    %c0_14 = arith.constant 0 : index
    %c0_15 = arith.constant 0 : index
    %32 = vector.load %arg6[%c0_14, %c0_15] : memref<32x384xbf16, #tpu.memory_space<vmem>>, vector<32x384xbf16>
    tpu.vector_store %arg6[%c0_14, %c0_15], %31 {strides = array<i32>} : memref<32x384xbf16, #tpu.memory_space<vmem>>, vector<32x384xbf16>,
    return
  }
  func.func @transform_0(%arg0: i32) -> (i32, i32) {
    %c0_i32 = arith.constant 0 : i32
    %c0_i32_0 = arith.constant 0 : i32
    return %arg0, %c0_i32 : i32, i32
  }
  func.func @transform_1(%arg0: i32) -> (i32, i32) {
    %c0_i32 = arith.constant 0 : i32
    %c0_i32_0 = arith.constant 0 : i32
    %c0_i32_1 = arith.constant 0 : i32
    return %c0_i32, %c0_i32_0 : i32, i32
  }
  func.func @transform_2(%arg0: i32) -> (i32, i32) {
    %c0_i32 = arith.constant 0 : i32
    %c0_i32_0 = arith.constant 0 : i32
    %c0_i32_1 = arith.constant 0 : i32
    return %c0_i32, %c0_i32_0 : i32, i32
  }
  func.func @transform_3(%arg0: i32) -> (i32, i32) {
    %c0_i32 = arith.constant 0 : i32
    %c0_i32_0 = arith.constant 0 : i32
    %c0_i32_1 = arith.constant 0 : i32
    return %c0_i32, %c0_i32_0 : i32, i32
  }
  func.func @transform_4(%arg0: i32) -> (i32, i32) {
    %c0_i32 = arith.constant 0 : i32
    %c0_i32_0 = arith.constant 0 : i32
    %c0_i32_1 = arith.constant 0 : i32
    return %c0_i32, %c0_i32_0 : i32, i32
  }
  func.func @transform_5(%arg0: i32) -> (i32, i32) {
    %c0_i32 = arith.constant 0 : i32
    %c0_i32_0 = arith.constant 0 : i32
    return %arg0, %c0_i32 : i32, i32
  }
}

module attributes {stable_mosaic.version = 11 : i64} {
  func.func @_ln_matmul_kernel(%arg0: i32, %arg1: memref<32x128xf32, #tpu.memory_space<vmem>>, %arg2: memref<1x128xf32, #tpu.memory_space<vmem>>, %arg3: memref<1x128xf32, #tpu.memory_space<vmem>>, %arg4: memref<128x256xbf16, #tpu.memory_space<vmem>>, %arg5: memref<1x256xf32, #tpu.memory_space<vmem>>, %arg6: memref<32x256xbf16, #tpu.memory_space<vmem>>) attributes {dimension_semantics = [#tpu.dimension_semantics<parallel>], iteration_bounds = array<i64: 1>, scalar_prefetch = 0 : i64, scratch_operands = 0 : i64, tpu.core_type = #tpu.core_type<tc>, window_params = [{transform_indices = @transform_0, window_bounds = array<i64: 32, 128>}, {pipeline_mode = #tpu.pipeline_mode<synchronous>, transform_indices = @transform_1, window_bounds = array<i64: 1, 128>}, {pipeline_mode = #tpu.pipeline_mode<synchronous>, transform_indices = @transform_2, window_bounds = array<i64: 1, 128>}, {pipeline_mode = #tpu.pipeline_mode<synchronous>, transform_indices = @transform_3, window_bounds = array<i64: 128, 256>}, {pipeline_mode = #tpu.pipeline_mode<synchronous>, transform_indices = @transform_4, window_bounds = array<i64: 1, 256>}, {transform_indices = @transform_5, window_bounds = array<i64: 32, 256>}]} {
    %c0 = arith.constant 0 : index
    %c0_0 = arith.constant 0 : index
    %0 = vector.load %arg1[%c0, %c0_0] : memref<32x128xf32, #tpu.memory_space<vmem>>, vector<32x128xf32>
    %c0_1 = arith.constant 0 : index
    %c0_2 = arith.constant 0 : index
    %1 = vector.load %arg2[%c0_1, %c0_2] : memref<1x128xf32, #tpu.memory_space<vmem>>, vector<1x128xf32>
    %c0_3 = arith.constant 0 : index
    %c0_4 = arith.constant 0 : index
    %2 = vector.load %arg3[%c0_3, %c0_4] : memref<1x128xf32, #tpu.memory_space<vmem>>, vector<1x128xf32>
    %cst = arith.constant dense<0.000000e+00> : vector<32xf32>
    %3 = vector.multi_reduction <add>, %0, %cst [1] : vector<32x128xf32> to vector<32xf32>
    %4 = vector.shape_cast %3 : vector<32xf32> to vector<32x1xf32>
    %cst_5 = arith.constant 1.280000e+02 : f32
    %5 = vector.broadcast %cst_5 : f32 to vector<32x1xf32>
    %6 = arith.divf %4, %5 : vector<32x1xf32>
    %7 = vector.broadcast %6 : vector<32x1xf32> to vector<32x128xf32>
    %8 = arith.subf %0, %7 : vector<32x128xf32>
    %9 = arith.mulf %8, %8 : vector<32x128xf32>
    %cst_6 = arith.constant dense<0.000000e+00> : vector<32xf32>
    %10 = vector.multi_reduction <add>, %9, %cst_6 [1] : vector<32x128xf32> to vector<32xf32>
    %11 = vector.shape_cast %10 : vector<32xf32> to vector<32x1xf32>
    %cst_7 = arith.constant 1.280000e+02 : f32
    %12 = vector.broadcast %cst_7 : f32 to vector<32x1xf32>
    %13 = arith.divf %11, %12 : vector<32x1xf32>
    %14 = vector.broadcast %6 : vector<32x1xf32> to vector<32x128xf32>
    %15 = arith.subf %0, %14 : vector<32x128xf32>
    %cst_8 = arith.constant 9.99999974E-6 : f32
    %16 = vector.broadcast %cst_8 : f32 to vector<32x1xf32>
    %17 = arith.addf %13, %16 : vector<32x1xf32>
    %18 = math.rsqrt %17 : vector<32x1xf32>
    %19 = vector.broadcast %18 : vector<32x1xf32> to vector<32x128xf32>
    %20 = arith.mulf %15, %19 : vector<32x128xf32>
    %21 = vector.broadcast %1 : vector<1x128xf32> to vector<32x128xf32>
    %22 = arith.mulf %20, %21 : vector<32x128xf32>
    %23 = vector.broadcast %2 : vector<1x128xf32> to vector<32x128xf32>
    %24 = arith.addf %22, %23 : vector<32x128xf32>
    %25 = arith.truncf %24 : vector<32x128xf32> to vector<32x128xbf16>
    %c0_9 = arith.constant 0 : index
    %c0_10 = arith.constant 0 : index
    %26 = vector.load %arg4[%c0_9, %c0_10] : memref<128x256xbf16, #tpu.memory_space<vmem>>, vector<128x256xbf16>
    %cst_11 = arith.constant dense<0.000000e+00> : vector<32x256xf32>
    %27 = tpu.matmul %25, %26, %cst_11 {dimension_numbers = #tpu.dot_dimension_numbers<[1], [0], [0], [1], [0, 0, 1, 1], [], []>} : vector<32x128xbf16>, vector<128x256xbf16>, vector<32x256xf32> -> vector<32x256xf32>
    %c0_12 = arith.constant 0 : index
    %c0_13 = arith.constant 0 : index
    %28 = vector.load %arg5[%c0_12, %c0_13] : memref<1x256xf32, #tpu.memory_space<vmem>>, vector<1x256xf32>
    %29 = vector.broadcast %28 : vector<1x256xf32> to vector<32x256xf32>
    %30 = arith.addf %27, %29 : vector<32x256xf32>
    %cst_14 = arith.constant 5.000000e-01 : f32
    %31 = vector.broadcast %cst_14 : f32 to vector<32x256xf32>
    %32 = arith.mulf %31, %30 : vector<32x256xf32>
    %cst_15 = arith.constant 4.471500e-02 : f32
    %33 = vector.broadcast %cst_15 : f32 to vector<32x256xf32>
    %34 = arith.mulf %33, %30 : vector<32x256xf32>
    %35 = arith.mulf %34, %30 : vector<32x256xf32>
    %36 = arith.mulf %35, %30 : vector<32x256xf32>
    %37 = arith.addf %30, %36 : vector<32x256xf32>
    %cst_16 = arith.constant 0.797884583 : f32
    %38 = vector.broadcast %cst_16 : f32 to vector<32x256xf32>
    %39 = arith.mulf %38, %37 : vector<32x256xf32>
    %40 = math.tanh %39 : vector<32x256xf32>
    %cst_17 = arith.constant 1.000000e+00 : f32
    %41 = vector.broadcast %cst_17 : f32 to vector<32x256xf32>
    %42 = arith.addf %41, %40 : vector<32x256xf32>
    %43 = arith.mulf %32, %42 : vector<32x256xf32>
    %44 = arith.truncf %43 : vector<32x256xf32> to vector<32x256xbf16>
    %c0_18 = arith.constant 0 : index
    %c0_19 = arith.constant 0 : index
    %45 = vector.load %arg6[%c0_18, %c0_19] : memref<32x256xbf16, #tpu.memory_space<vmem>>, vector<32x256xbf16>
    tpu.vector_store %arg6[%c0_18, %c0_19], %44 {strides = array<i32>} : memref<32x256xbf16, #tpu.memory_space<vmem>>, vector<32x256xbf16>,
    return
  }
  func.func @transform_0(%arg0: i32) -> (i32, i32) {
    %c0_i32 = arith.constant 0 : i32
    %c0_i32_0 = arith.constant 0 : i32
    return %arg0, %c0_i32 : i32, i32
  }
  func.func @transform_1(%arg0: i32) -> (i32, i32) {
    %c0_i32 = arith.constant 0 : i32
    %c0_i32_0 = arith.constant 0 : i32
    %c0_i32_1 = arith.constant 0 : i32
    return %c0_i32, %c0_i32_0 : i32, i32
  }
  func.func @transform_2(%arg0: i32) -> (i32, i32) {
    %c0_i32 = arith.constant 0 : i32
    %c0_i32_0 = arith.constant 0 : i32
    %c0_i32_1 = arith.constant 0 : i32
    return %c0_i32, %c0_i32_0 : i32, i32
  }
  func.func @transform_3(%arg0: i32) -> (i32, i32) {
    %c0_i32 = arith.constant 0 : i32
    %c0_i32_0 = arith.constant 0 : i32
    %c0_i32_1 = arith.constant 0 : i32
    return %c0_i32, %c0_i32_0 : i32, i32
  }
  func.func @transform_4(%arg0: i32) -> (i32, i32) {
    %c0_i32 = arith.constant 0 : i32
    %c0_i32_0 = arith.constant 0 : i32
    %c0_i32_1 = arith.constant 0 : i32
    return %c0_i32, %c0_i32_0 : i32, i32
  }
  func.func @transform_5(%arg0: i32) -> (i32, i32) {
    %c0_i32 = arith.constant 0 : i32
    %c0_i32_0 = arith.constant 0 : i32
    return %arg0, %c0_i32 : i32, i32
  }
}

module attributes {stable_mosaic.version = 11 : i64} {
  func.func @_flash_attn_kernel(%arg0: i32, %arg1: i32, %arg2: i32, %arg3: i32, %arg4: memref<1x1x16x64xbf16, #tpu.memory_space<vmem>>, %arg5: memref<1x1x16x64xbf16, #tpu.memory_space<vmem>>, %arg6: memref<1x1x16x64xbf16, #tpu.memory_space<vmem>>, %arg7: memref<1x1x16x64xbf16, #tpu.memory_space<vmem>>, %arg8: memref<16x1xf32, #tpu.memory_space<vmem>>, %arg9: memref<16x1xf32, #tpu.memory_space<vmem>>, %arg10: memref<16x64xf32, #tpu.memory_space<vmem>>) attributes {dimension_semantics = [#tpu.dimension_semantics<parallel>, #tpu.dimension_semantics<parallel>, #tpu.dimension_semantics<parallel>, #tpu.dimension_semantics<arbitrary>], iteration_bounds = array<i64: 2, 2, 1, 1>, scalar_prefetch = 0 : i64, scratch_operands = 3 : i64, tpu.core_type = #tpu.core_type<tc>, window_params = [{transform_indices = @transform_0, window_bounds = array<i64: 1, 1, 16, 64>}, {transform_indices = @transform_1, window_bounds = array<i64: 1, 1, 16, 64>}, {transform_indices = @transform_2, window_bounds = array<i64: 1, 1, 16, 64>}, {transform_indices = @transform_3, window_bounds = array<i64: 1, 1, 16, 64>}]} {
    %c0_i32 = arith.constant 0 : i32
    %0 = arith.cmpi eq, %arg3, %c0_i32 : i32
    %1 = arith.extui %0 : i1 to i32
    %c0_i32_0 = arith.constant 0 : i32
    %2 = arith.cmpi ne, %1, %c0_i32_0 : i32
    scf.if %2 {
      %cst_29 = arith.constant 0xFF800000 : f32
      %36 = vector.broadcast %cst_29 : f32 to vector<16x1xf32>
      %c0_30 = arith.constant 0 : index
      %c0_31 = arith.constant 0 : index
      %37 = vector.load %arg8[%c0_30, %c0_31] : memref<16x1xf32, #tpu.memory_space<vmem>>, vector<16x1xf32>
      tpu.vector_store %arg8[%c0_30, %c0_31], %36 {strides = array<i32>} : memref<16x1xf32, #tpu.memory_space<vmem>>, vector<16x1xf32>,
      %cst_32 = arith.constant 0.000000e+00 : f32
      %38 = vector.broadcast %cst_32 : f32 to vector<16x1xf32>
      %c0_33 = arith.constant 0 : index
      %c0_34 = arith.constant 0 : index
      %39 = vector.load %arg9[%c0_33, %c0_34] : memref<16x1xf32, #tpu.memory_space<vmem>>, vector<16x1xf32>
      tpu.vector_store %arg9[%c0_33, %c0_34], %38 {strides = array<i32>} : memref<16x1xf32, #tpu.memory_space<vmem>>, vector<16x1xf32>,
      %cst_35 = arith.constant 0.000000e+00 : f32
      %40 = vector.broadcast %cst_35 : f32 to vector<16x64xf32>
      %c0_36 = arith.constant 0 : index
      %c0_37 = arith.constant 0 : index
      %41 = vector.load %arg10[%c0_36, %c0_37] : memref<16x64xf32, #tpu.memory_space<vmem>>, vector<16x64xf32>
      tpu.vector_store %arg10[%c0_36, %c0_37], %40 {strides = array<i32>} : memref<16x64xf32, #tpu.memory_space<vmem>>, vector<16x64xf32>,
    } else {
    }
    %c0 = arith.constant 0 : index
    %c0_1 = arith.constant 0 : index
    %c0_2 = arith.constant 0 : index
    %c0_3 = arith.constant 0 : index
    %3 = vector.load %arg4[%c0, %c0_1, %c0_2, %c0_3] : memref<1x1x16x64xbf16, #tpu.memory_space<vmem>>, vector<1x1x16x64xbf16>
    %4 = vector.shape_cast %3 : vector<1x1x16x64xbf16> to vector<16x64xbf16>
    %c0_4 = arith.constant 0 : index
    %c0_5 = arith.constant 0 : index
    %c0_6 = arith.constant 0 : index
    %c0_7 = arith.constant 0 : index
    %5 = vector.load %arg5[%c0_4, %c0_5, %c0_6, %c0_7] : memref<1x1x16x64xbf16, #tpu.memory_space<vmem>>, vector<1x1x16x64xbf16>
    %6 = vector.shape_cast %5 : vector<1x1x16x64xbf16> to vector<16x64xbf16>
    %cst = arith.constant dense<0.000000e+00> : vector<16x16xf32>
    %7 = tpu.matmul %4, %6, %cst {dimension_numbers = #tpu.dot_dimension_numbers<[1], [1], [0], [0], [0, 0, 1, 0], [], []>} : vector<16x64xbf16>, vector<16x64xbf16>, vector<16x16xf32> -> vector<16x16xf32>
    %c0_8 = arith.constant 0 : index
    %c0_9 = arith.constant 0 : index
    %8 = vector.load %arg8[%c0_8, %c0_9] : memref<16x1xf32, #tpu.memory_space<vmem>>, vector<16x1xf32>
    %cst_10 = arith.constant dense<0xFF800000> : vector<16xf32>
    %9 = vector.multi_reduction <maximumf>, %7, %cst_10 [1] : vector<16x16xf32> to vector<16xf32>
    %10 = vector.shape_cast %9 : vector<16xf32> to vector<16x1xf32>
    %11 = arith.maximumf %8, %10 : vector<16x1xf32>
    %12 = arith.subf %8, %11 : vector<16x1xf32>
    %13 = math.exp %12 : vector<16x1xf32>
    %14 = vector.broadcast %11 : vector<16x1xf32> to vector<16x16xf32>
    %15 = arith.subf %7, %14 : vector<16x16xf32>
    %16 = math.exp %15 : vector<16x16xf32>
    %c0_11 = arith.constant 0 : index
    %c0_12 = arith.constant 0 : index
    %17 = vector.load %arg9[%c0_11, %c0_12] : memref<16x1xf32, #tpu.memory_space<vmem>>, vector<16x1xf32>
    %18 = arith.mulf %13, %17 : vector<16x1xf32>
    %cst_13 = arith.constant dense<0.000000e+00> : vector<16xf32>
    %19 = vector.multi_reduction <add>, %16, %cst_13 [1] : vector<16x16xf32> to vector<16xf32>
    %20 = vector.shape_cast %19 : vector<16xf32> to vector<16x1xf32>
    %21 = arith.addf %18, %20 : vector<16x1xf32>
    %c0_14 = arith.constant 0 : index
    %c0_15 = arith.constant 0 : index
    %22 = vector.load %arg9[%c0_14, %c0_15] : memref<16x1xf32, #tpu.memory_space<vmem>>, vector<16x1xf32>
    tpu.vector_store %arg9[%c0_14, %c0_15], %21 {strides = array<i32>} : memref<16x1xf32, #tpu.memory_space<vmem>>, vector<16x1xf32>,
    %c0_16 = arith.constant 0 : index
    %c0_17 = arith.constant 0 : index
    %23 = vector.load %arg10[%c0_16, %c0_17] : memref<16x64xf32, #tpu.memory_space<vmem>>, vector<16x64xf32>
    %24 = vector.broadcast %13 : vector<16x1xf32> to vector<16x64xf32>
    %25 = arith.mulf %24, %23 : vector<16x64xf32>
    %26 = arith.truncf %16 : vector<16x16xf32> to vector<16x16xbf16>
    %c0_18 = arith.constant 0 : index
    %c0_19 = arith.constant 0 : index
    %c0_20 = arith.constant 0 : index
    %c0_21 = arith.constant 0 : index
    %27 = vector.load %arg6[%c0_18, %c0_19, %c0_20, %c0_21] : memref<1x1x16x64xbf16, #tpu.memory_space<vmem>>, vector<1x1x16x64xbf16>
    %28 = vector.shape_cast %27 : vector<1x1x16x64xbf16> to vector<16x64xbf16>
    %cst_22 = arith.constant dense<0.000000e+00> : vector<16x64xf32>
    %29 = tpu.matmul %26, %28, %cst_22 {dimension_numbers = #tpu.dot_dimension_numbers<[1], [0], [0], [1], [0, 0, 1, 1], [], []>} : vector<16x16xbf16>, vector<16x64xbf16>, vector<16x64xf32> -> vector<16x64xf32>
    %30 = arith.addf %25, %29 : vector<16x64xf32>
    %c0_23 = arith.constant 0 : index
    %c0_24 = arith.constant 0 : index
    %31 = vector.load %arg10[%c0_23, %c0_24] : memref<16x64xf32, #tpu.memory_space<vmem>>, vector<16x64xf32>
    tpu.vector_store %arg10[%c0_23, %c0_24], %30 {strides = array<i32>} : memref<16x64xf32, #tpu.memory_space<vmem>>, vector<16x64xf32>,
    %c0_25 = arith.constant 0 : index
    %c0_26 = arith.constant 0 : index
    %32 = vector.load %arg8[%c0_25, %c0_26] : memref<16x1xf32, #tpu.memory_space<vmem>>, vector<16x1xf32>
    tpu.vector_store %arg8[%c0_25, %c0_26], %11 {strides = array<i32>} : memref<16x1xf32, #tpu.memory_space<vmem>>, vector<16x1xf32>,
    %c0_i32_27 = arith.constant 0 : i32
    %33 = arith.cmpi eq, %arg3, %c0_i32_27 : i32
    %34 = arith.extui %33 : i1 to i32
    %c0_i32_28 = arith.constant 0 : i32
    %35 = arith.cmpi ne, %34, %c0_i32_28 : i32
    scf.if %35 {
      %c0_29 = arith.constant 0 : index
      %c0_30 = arith.constant 0 : index
      %36 = vector.load %arg10[%c0_29, %c0_30] : memref<16x64xf32, #tpu.memory_space<vmem>>, vector<16x64xf32>
      %c0_31 = arith.constant 0 : index
      %c0_32 = arith.constant 0 : index
      %37 = vector.load %arg9[%c0_31, %c0_32] : memref<16x1xf32, #tpu.memory_space<vmem>>, vector<16x1xf32>
      %38 = tpu.reciprocal %37 {approx = true} : vector<16x1xf32> -> vector<16x1xf32>
      %39 = vector.broadcast %38 : vector<16x1xf32> to vector<16x64xf32>
      %40 = arith.mulf %36, %39 : vector<16x64xf32>
      %41 = arith.truncf %40 : vector<16x64xf32> to vector<16x64xbf16>
      %c0_33 = arith.constant 0 : index
      %c0_34 = arith.constant 0 : index
      %c0_35 = arith.constant 0 : index
      %c0_36 = arith.constant 0 : index
      %42 = vector.load %arg7[%c0_33, %c0_34, %c0_35, %c0_36] : memref<1x1x16x64xbf16, #tpu.memory_space<vmem>>, vector<1x1x16x64xbf16>
      %43 = vector.shape_cast %42 : vector<1x1x16x64xbf16> to vector<16x64xbf16>
      %44 = vector.shape_cast %41 : vector<16x64xbf16> to vector<1x1x16x64xbf16>
      tpu.vector_store %arg7[%c0_33, %c0_34, %c0_35, %c0_36], %44 {strides = array<i32>} : memref<1x1x16x64xbf16, #tpu.memory_space<vmem>>, vector<1x1x16x64xbf16>,
    } else {
    }
    return
  }
  func.func @transform_0(%arg0: i32, %arg1: i32, %arg2: i32, %arg3: i32) -> (i32, i32, i32, i32) {
    %c0_i32 = arith.constant 0 : i32
    %c0_i32_0 = arith.constant 0 : i32
    return %arg0, %arg1, %arg2, %c0_i32 : i32, i32, i32, i32
  }
  func.func @transform_1(%arg0: i32, %arg1: i32, %arg2: i32, %arg3: i32) -> (i32, i32, i32, i32) {
    %c0_i32 = arith.constant 0 : i32
    %c0_i32_0 = arith.constant 0 : i32
    return %arg0, %arg1, %arg3, %c0_i32 : i32, i32, i32, i32
  }
  func.func @transform_2(%arg0: i32, %arg1: i32, %arg2: i32, %arg3: i32) -> (i32, i32, i32, i32) {
    %c0_i32 = arith.constant 0 : i32
    %c0_i32_0 = arith.constant 0 : i32
    return %arg0, %arg1, %arg3, %c0_i32 : i32, i32, i32, i32
  }
  func.func @transform_3(%arg0: i32, %arg1: i32, %arg2: i32, %arg3: i32) -> (i32, i32, i32, i32) {
    %c0_i32 = arith.constant 0 : i32
    %c0_i32_0 = arith.constant 0 : i32
    return %arg0, %arg1, %arg2, %c0_i32 : i32, i32, i32, i32
  }
}

module attributes {stable_mosaic.version = 11 : i64} {
  func.func @_matmul_residual_kernel(%arg0: i32, %arg1: memref<32x128xbf16, #tpu.memory_space<vmem>>, %arg2: memref<32x128xf32, #tpu.memory_space<vmem>>, %arg3: memref<128x128xbf16, #tpu.memory_space<vmem>>, %arg4: memref<1x128xf32, #tpu.memory_space<vmem>>, %arg5: memref<32x128xf32, #tpu.memory_space<vmem>>) attributes {dimension_semantics = [#tpu.dimension_semantics<parallel>], iteration_bounds = array<i64: 1>, scalar_prefetch = 0 : i64, scratch_operands = 0 : i64, tpu.core_type = #tpu.core_type<tc>, window_params = [{transform_indices = @transform_0, window_bounds = array<i64: 32, 128>}, {transform_indices = @transform_1, window_bounds = array<i64: 32, 128>}, {pipeline_mode = #tpu.pipeline_mode<synchronous>, transform_indices = @transform_2, window_bounds = array<i64: 128, 128>}, {pipeline_mode = #tpu.pipeline_mode<synchronous>, transform_indices = @transform_3, window_bounds = array<i64: 1, 128>}, {transform_indices = @transform_4, window_bounds = array<i64: 32, 128>}]} {
    %c0 = arith.constant 0 : index
    %c0_0 = arith.constant 0 : index
    %0 = vector.load %arg1[%c0, %c0_0] : memref<32x128xbf16, #tpu.memory_space<vmem>>, vector<32x128xbf16>
    %c0_1 = arith.constant 0 : index
    %c0_2 = arith.constant 0 : index
    %1 = vector.load %arg3[%c0_1, %c0_2] : memref<128x128xbf16, #tpu.memory_space<vmem>>, vector<128x128xbf16>
    %cst = arith.constant dense<0.000000e+00> : vector<32x128xf32>
    %2 = tpu.matmul %0, %1, %cst {dimension_numbers = #tpu.dot_dimension_numbers<[1], [0], [0], [1], [0, 0, 1, 1], [], []>} : vector<32x128xbf16>, vector<128x128xbf16>, vector<32x128xf32> -> vector<32x128xf32>
    %c0_3 = arith.constant 0 : index
    %c0_4 = arith.constant 0 : index
    %3 = vector.load %arg2[%c0_3, %c0_4] : memref<32x128xf32, #tpu.memory_space<vmem>>, vector<32x128xf32>
    %4 = arith.addf %3, %2 : vector<32x128xf32>
    %c0_5 = arith.constant 0 : index
    %c0_6 = arith.constant 0 : index
    %5 = vector.load %arg4[%c0_5, %c0_6] : memref<1x128xf32, #tpu.memory_space<vmem>>, vector<1x128xf32>
    %6 = vector.broadcast %5 : vector<1x128xf32> to vector<32x128xf32>
    %7 = arith.addf %4, %6 : vector<32x128xf32>
    %c0_7 = arith.constant 0 : index
    %c0_8 = arith.constant 0 : index
    %8 = vector.load %arg5[%c0_7, %c0_8] : memref<32x128xf32, #tpu.memory_space<vmem>>, vector<32x128xf32>
    tpu.vector_store %arg5[%c0_7, %c0_8], %7 {strides = array<i32>} : memref<32x128xf32, #tpu.memory_space<vmem>>, vector<32x128xf32>,
    return
  }
  func.func @transform_0(%arg0: i32) -> (i32, i32) {
    %c0_i32 = arith.constant 0 : i32
    %c0_i32_0 = arith.constant 0 : i32
    return %arg0, %c0_i32 : i32, i32
  }
  func.func @transform_1(%arg0: i32) -> (i32, i32) {
    %c0_i32 = arith.constant 0 : i32
    %c0_i32_0 = arith.constant 0 : i32
    return %arg0, %c0_i32 : i32, i32
  }
  func.func @transform_2(%arg0: i32) -> (i32, i32) {
    %c0_i32 = arith.constant 0 : i32
    %c0_i32_0 = arith.constant 0 : i32
    %c0_i32_1 = arith.constant 0 : i32
    return %c0_i32, %c0_i32_0 : i32, i32
  }
  func.func @transform_3(%arg0: i32) -> (i32, i32) {
    %c0_i32 = arith.constant 0 : i32
    %c0_i32_0 = arith.constant 0 : i32
    %c0_i32_1 = arith.constant 0 : i32
    return %c0_i32, %c0_i32_0 : i32, i32
  }
  func.func @transform_4(%arg0: i32) -> (i32, i32) {
    %c0_i32 = arith.constant 0 : i32
    %c0_i32_0 = arith.constant 0 : i32
    return %arg0, %c0_i32 : i32, i32
  }
}

module attributes {stable_mosaic.version = 11 : i64} {
  func.func @_matmul_residual_kernel(%arg0: i32, %arg1: memref<32x256xbf16, #tpu.memory_space<vmem>>, %arg2: memref<32x128xf32, #tpu.memory_space<vmem>>, %arg3: memref<256x128xbf16, #tpu.memory_space<vmem>>, %arg4: memref<1x128xf32, #tpu.memory_space<vmem>>, %arg5: memref<32x128xf32, #tpu.memory_space<vmem>>) attributes {dimension_semantics = [#tpu.dimension_semantics<parallel>], iteration_bounds = array<i64: 1>, scalar_prefetch = 0 : i64, scratch_operands = 0 : i64, tpu.core_type = #tpu.core_type<tc>, window_params = [{transform_indices = @transform_0, window_bounds = array<i64: 32, 256>}, {transform_indices = @transform_1, window_bounds = array<i64: 32, 128>}, {pipeline_mode = #tpu.pipeline_mode<synchronous>, transform_indices = @transform_2, window_bounds = array<i64: 256, 128>}, {pipeline_mode = #tpu.pipeline_mode<synchronous>, transform_indices = @transform_3, window_bounds = array<i64: 1, 128>}, {transform_indices = @transform_4, window_bounds = array<i64: 32, 128>}]} {
    %c0 = arith.constant 0 : index
    %c0_0 = arith.constant 0 : index
    %0 = vector.load %arg1[%c0, %c0_0] : memref<32x256xbf16, #tpu.memory_space<vmem>>, vector<32x256xbf16>
    %c0_1 = arith.constant 0 : index
    %c0_2 = arith.constant 0 : index
    %1 = vector.load %arg3[%c0_1, %c0_2] : memref<256x128xbf16, #tpu.memory_space<vmem>>, vector<256x128xbf16>
    %cst = arith.constant dense<0.000000e+00> : vector<32x128xf32>
    %2 = tpu.matmul %0, %1, %cst {dimension_numbers = #tpu.dot_dimension_numbers<[1], [0], [0], [1], [0, 0, 1, 1], [], []>} : vector<32x256xbf16>, vector<256x128xbf16>, vector<32x128xf32> -> vector<32x128xf32>
    %c0_3 = arith.constant 0 : index
    %c0_4 = arith.constant 0 : index
    %3 = vector.load %arg2[%c0_3, %c0_4] : memref<32x128xf32, #tpu.memory_space<vmem>>, vector<32x128xf32>
    %4 = arith.addf %3, %2 : vector<32x128xf32>
    %c0_5 = arith.constant 0 : index
    %c0_6 = arith.constant 0 : index
    %5 = vector.load %arg4[%c0_5, %c0_6] : memref<1x128xf32, #tpu.memory_space<vmem>>, vector<1x128xf32>
    %6 = vector.broadcast %5 : vector<1x128xf32> to vector<32x128xf32>
    %7 = arith.addf %4, %6 : vector<32x128xf32>
    %c0_7 = arith.constant 0 : index
    %c0_8 = arith.constant 0 : index
    %8 = vector.load %arg5[%c0_7, %c0_8] : memref<32x128xf32, #tpu.memory_space<vmem>>, vector<32x128xf32>
    tpu.vector_store %arg5[%c0_7, %c0_8], %7 {strides = array<i32>} : memref<32x128xf32, #tpu.memory_space<vmem>>, vector<32x128xf32>,
    return
  }
  func.func @transform_0(%arg0: i32) -> (i32, i32) {
    %c0_i32 = arith.constant 0 : i32
    %c0_i32_0 = arith.constant 0 : i32
    return %arg0, %c0_i32 : i32, i32
  }
  func.func @transform_1(%arg0: i32) -> (i32, i32) {
    %c0_i32 = arith.constant 0 : i32
    %c0_i32_0 = arith.constant 0 : i32
    return %arg0, %c0_i32 : i32, i32
  }
  func.func @transform_2(%arg0: i32) -> (i32, i32) {
    %c0_i32 = arith.constant 0 : i32
    %c0_i32_0 = arith.constant 0 : i32
    %c0_i32_1 = arith.constant 0 : i32
    return %c0_i32, %c0_i32_0 : i32, i32
  }
  func.func @transform_3(%arg0: i32) -> (i32, i32) {
    %c0_i32 = arith.constant 0 : i32
    %c0_i32_0 = arith.constant 0 : i32
    %c0_i32_1 = arith.constant 0 : i32
    return %c0_i32, %c0_i32_0 : i32, i32
  }
  func.func @transform_4(%arg0: i32) -> (i32, i32) {
    %c0_i32 = arith.constant 0 : i32
    %c0_i32_0 = arith.constant 0 : i32
    return %arg0, %c0_i32 : i32, i32
  }
}

module attributes {stable_mosaic.version = 11 : i64} {
  func.func @_layernorm_kernel(%arg0: i32, %arg1: memref<32x128xf32, #tpu.memory_space<vmem>>, %arg2: memref<1x128xf32, #tpu.memory_space<vmem>>, %arg3: memref<1x128xf32, #tpu.memory_space<vmem>>, %arg4: memref<32x128xf32, #tpu.memory_space<vmem>>) attributes {dimension_semantics = [#tpu.dimension_semantics<parallel>], iteration_bounds = array<i64: 1>, scalar_prefetch = 0 : i64, scratch_operands = 0 : i64, tpu.core_type = #tpu.core_type<tc>, window_params = [{transform_indices = @transform_0, window_bounds = array<i64: 32, 128>}, {pipeline_mode = #tpu.pipeline_mode<synchronous>, transform_indices = @transform_1, window_bounds = array<i64: 1, 128>}, {pipeline_mode = #tpu.pipeline_mode<synchronous>, transform_indices = @transform_2, window_bounds = array<i64: 1, 128>}, {transform_indices = @transform_3, window_bounds = array<i64: 32, 128>}]} {
    %c0 = arith.constant 0 : index
    %c0_0 = arith.constant 0 : index
    %0 = vector.load %arg1[%c0, %c0_0] : memref<32x128xf32, #tpu.memory_space<vmem>>, vector<32x128xf32>
    %c0_1 = arith.constant 0 : index
    %c0_2 = arith.constant 0 : index
    %1 = vector.load %arg2[%c0_1, %c0_2] : memref<1x128xf32, #tpu.memory_space<vmem>>, vector<1x128xf32>
    %c0_3 = arith.constant 0 : index
    %c0_4 = arith.constant 0 : index
    %2 = vector.load %arg3[%c0_3, %c0_4] : memref<1x128xf32, #tpu.memory_space<vmem>>, vector<1x128xf32>
    %cst = arith.constant dense<0.000000e+00> : vector<32xf32>
    %3 = vector.multi_reduction <add>, %0, %cst [1] : vector<32x128xf32> to vector<32xf32>
    %4 = vector.shape_cast %3 : vector<32xf32> to vector<32x1xf32>
    %cst_5 = arith.constant 1.280000e+02 : f32
    %5 = vector.broadcast %cst_5 : f32 to vector<32x1xf32>
    %6 = arith.divf %4, %5 : vector<32x1xf32>
    %7 = vector.broadcast %6 : vector<32x1xf32> to vector<32x128xf32>
    %8 = arith.subf %0, %7 : vector<32x128xf32>
    %9 = arith.mulf %8, %8 : vector<32x128xf32>
    %cst_6 = arith.constant dense<0.000000e+00> : vector<32xf32>
    %10 = vector.multi_reduction <add>, %9, %cst_6 [1] : vector<32x128xf32> to vector<32xf32>
    %11 = vector.shape_cast %10 : vector<32xf32> to vector<32x1xf32>
    %cst_7 = arith.constant 1.280000e+02 : f32
    %12 = vector.broadcast %cst_7 : f32 to vector<32x1xf32>
    %13 = arith.divf %11, %12 : vector<32x1xf32>
    %14 = vector.broadcast %6 : vector<32x1xf32> to vector<32x128xf32>
    %15 = arith.subf %0, %14 : vector<32x128xf32>
    %cst_8 = arith.constant 9.99999974E-6 : f32
    %16 = vector.broadcast %cst_8 : f32 to vector<32x1xf32>
    %17 = arith.addf %13, %16 : vector<32x1xf32>
    %18 = math.rsqrt %17 : vector<32x1xf32>
    %19 = vector.broadcast %18 : vector<32x1xf32> to vector<32x128xf32>
    %20 = arith.mulf %15, %19 : vector<32x128xf32>
    %21 = vector.broadcast %1 : vector<1x128xf32> to vector<32x128xf32>
    %22 = arith.mulf %20, %21 : vector<32x128xf32>
    %23 = vector.broadcast %2 : vector<1x128xf32> to vector<32x128xf32>
    %24 = arith.addf %22, %23 : vector<32x128xf32>
    %c0_9 = arith.constant 0 : index
    %c0_10 = arith.constant 0 : index
    %25 = vector.load %arg4[%c0_9, %c0_10] : memref<32x128xf32, #tpu.memory_space<vmem>>, vector<32x128xf32>
    tpu.vector_store %arg4[%c0_9, %c0_10], %24 {strides = array<i32>} : memref<32x128xf32, #tpu.memory_space<vmem>>, vector<32x128xf32>,
    return
  }
  func.func @transform_0(%arg0: i32) -> (i32, i32) {
    %c0_i32 = arith.constant 0 : i32
    %c0_i32_0 = arith.constant 0 : i32
    return %arg0, %c0_i32 : i32, i32
  }
  func.func @transform_1(%arg0: i32) -> (i32, i32) {
    %c0_i32 = arith.constant 0 : i32
    %c0_i32_0 = arith.constant 0 : i32
    %c0_i32_1 = arith.constant 0 : i32
    return %c0_i32, %c0_i32_0 : i32, i32
  }
  func.func @transform_2(%arg0: i32) -> (i32, i32) {
    %c0_i32 = arith.constant 0 : i32
    %c0_i32_0 = arith.constant 0 : i32
    %c0_i32_1 = arith.constant 0 : i32
    return %c0_i32, %c0_i32_0 : i32, i32
  }
  func.func @transform_3(%arg0: i32) -> (i32, i32) {
    %c0_i32 = arith.constant 0 : i32
    %c0_i32_0 = arith.constant 0 : i32
    return %arg0, %c0_i32 : i32, i32
  }
}

</mosaic_0001>

<bundles_post_ra>
// kernel: speech_tower_forward.13
= control target key start
LH: loop header
LB: loop body
LE: loop exit
PB: predicated region body
PF: predicated region fallthrough
CT: control target
= control target key end

     0   :  { %s532_s12 = smov 0   ;;  %s534_s13 = smov 0   ;;  %s581_s0 = inlined_call_operand.vmem [shape: f32[2,32,24], index: 0, kind: input, shape index: {}]   ;;  %s582_s1 = inlined_call_operand.vmem [shape: bf16[24,128], index: 1, kind: input, shape index: {}]   ;;  %s583_s2 = inlined_call_operand.vmem [shape: f32[1,128], index: 2, kind: input, shape index: {}]   ;;  %s584_s3 = inlined_call_operand.vmem [shape: f32[2,32,128], index: 3, kind: output, shape index: {}]  }
   0x1   :  { %s536_s14 = smov 0  }
   0x2 LB: > { %s25_s15 = sadd.s32 1, %s506_s13  ;;  %p427_p0 = scmp.ge.s32.totalorder %s510_s14, 1  ;;  %s510_s14 = sphi %s536_s14, %s13_s14   ;;  %s506_s13 = sphi %s534_s13, %s586_s13   ;;  %s502_s12 = sphi %s532_s12, %s585_s12  }
   0x3   : > { %p27_p1 = scmp.ge.s32.totalorder %s25_s15, 2  ;;  %p158_p2 = scmp.lt.s32.totalorder %s510_s14, 3 }
   0x5   : > { %s588_s15 = smov (%p27_p1, %s25_s15), 0  ;;  %p159_p3 = pnand %p427_p0, %p158_p2 }
   0x6   : > { %p191_p4 = scmp.lt.s32.totalorder (!%p159_p3), %s502_s12, 1 }
   0x7   : > { %162 = sbr.rel (%p159_p3) target bundleno = 251 (0xfb), region = 32 }
   0xc   : > { %v478_v0 = vld [vmem:[%s582_s1 + $0x8] ss:$0 sps:$4 sm:$0xff]   ;;  %vm243_vm0 = vcmask 1043456   ;;  %v479_v1 = vld [vmem:[%s582_s1] sm:$0xff]   ;;  %s590_s12 = smov (!%p191_p4, %s502_s12), 1  ;;  %vm236_vm1 = vcmask 195584  }
   0xd   : > { %453 = vmatprep.subr.msk.bf16.mxu0 %vm243_vm0, %v478_v0  ;;  %v245_v2 = vsel %vm243_vm0, %v478_v0, 0  ;;  %s439_s20 = sshll.u32 %s590_s12, 5  ;;  %v432_v9 = vld [vmem:[%s583_s2] ss:$0 sm:$0xff] }
   0xe   : > { %446 = vmatpush3.bf16.msra.mxu0 %v245_v2  ;;  %s198_s23 = scalar_lea.vmem %s581_s0, %s439_s20  ;;  %s208_s28 = scalar_lea.vmem %s584_s3, %s439_s20 }
   0xf   : > { %447 = vmatprep.subr.bf16.mxu0 %v479_v1  ;;  %v211_v3 = vld [vmem:[%s198_s23] sm:$0xff]  ;;  %v212_v4 = vld [vmem:[%s198_s23 + $0x8] sm:$0xff]  ;;  %v213_v5 = vld [vmem:[%s198_s23 + $0x10] sm:$0xff] }
  0x10   : > { %v215_v6 = vpack.c.bf16 %v212_v4, %v211_v3  ;;  %v214_v7 = vld [vmem:[%s198_s23 + $0x18] sm:$0xff] }
  0x11   : > { %v216_v8 = vpack.c.bf16 %v214_v7, %v213_v5 }
  0x12   : > { %448 = vmatpush3.bf16.msra.mxu0 %v479_v1  ;;  %449 = vmatprep.mubr.msk.bf16.mxu0 %vm236_vm1, %v215_v6 }
  0x15   : > { %450 = vmatmul.mubr.msk.bf16.vlgmr.msra.gmra.mxu0 %vm236_vm1, %v216_v8 }
  0xd5   : > { %v451_v10 = vpop.f32.mrf.mxu0 }
  0xd6   : > { %v290_v11 = vadd.f32 %v451_v10, %v432_v9 }
  0xd7   : > { %v281_v12 = vpop.f32.mrf.mxu0 }
  0xd8   : > { %v302_v13 = vmul.f32 0.044715, %v290_v11  ;;  %v282_v14 = vadd.f32 %v432_v9, %v281_v12  ;;  %v298_v39 = vmul.f32 0.5, %v290_v11 }
  0xd9   : > { %v452_v15 = vpop.f32.mrf.mxu0 }
  0xda   : > { %v306_v16 = vmul.f32 %v302_v13, %v290_v11  ;;  %v300_v17 = vmul.f32 0.044715, %v282_v14  ;;  %v293_v18 = vadd.f32 %v452_v15, %v432_v9  ;;  %v296_v43 = vmul.f32 0.5, %v282_v14 }
  0xdb   : > { %v284_v19 = vpop.f32.mrf.mxu0 }
  0xdc   : > { %v310_v20 = vmul.f32 %v306_v16, %v290_v11  ;;  %v304_v21 = vmul.f32 %v300_v17, %v282_v14  ;;  %v303_v22 = vmul.f32 0.044715, %v293_v18  ;;  %v285_v23 = vadd.f32 %v432_v9, %v284_v19 }
  0xdd   : > { %v299_v47 = vmul.f32 0.5, %v293_v18 }
  0xde   : > { %v314_v24 = vadd.f32 %v310_v20, %v290_v11  ;;  %v308_v25 = vmul.f32 %v304_v21, %v282_v14  ;;  %v307_v26 = vmul.f32 %v303_v22, %v293_v18  ;;  %v301_v27 = vmul.f32 0.044715, %v285_v23 }
  0xdf   : > { %v297_v51 = vmul.f32 0.5, %v285_v23 }
  0xe0   : > { %v318_v28 = vmul.f32 0.7978846, %v314_v24  ;;  %v312_v29 = vadd.f32 %v308_v25, %v282_v14  ;;  %v311_v30 = vmul.f32 %v307_v26, %v293_v18  ;;  %v305_v31 = vmul.f32 %v301_v27, %v285_v23 }
  0xe2   : > { %480 = vtanh.f32 %v318_v28  ;;  %v316_v32 = vmul.f32 0.7978846, %v312_v29  ;;  %v315_v33 = vadd.f32 %v311_v30, %v293_v18  ;;  %v309_v34 = vmul.f32 %v305_v31, %v285_v23 }
  0xe4   : > { %482 = vtanh.f32 %v316_v32  ;;  %v319_v35 = vmul.f32 0.7978846, %v315_v33  ;;  %v313_v36 = vadd.f32 %v309_v34, %v285_v23 }
  0xe6   : > { %484 = vtanh.f32 %v319_v35  ;;  %v317_v37 = vmul.f32 0.7978846, %v313_v36 }
  0xe8   : > { %486 = vtanh.f32 %v317_v37 }
  0xef   : > { %v481_v38 = vpop.eup %480 }
  0xf0   : > { %v326_v40 = vadd.f32 1.0, %v481_v38 }
  0xf1   : > { %v483_v41 = vpop.eup %482 }
  0xf2   : > { %v330_v42 = vmul.f32 %v326_v40, %v298_v39  ;;  %v324_v44 = vadd.f32 1.0, %v483_v41 }
  0xf3   : > { %v485_v45 = vpop.eup %484 }
  0xf4   : > { %334 = vst [vmem:[%s208_s28 + $0x10] sm:$0xff] %v330_v42  ;;  %v328_v46 = vmul.f32 %v324_v44, %v296_v43  ;;  %v327_v48 = vadd.f32 1.0, %v485_v45 }
  0xf5   : > { %v487_v49 = vpop.eup %486 }
  0xf6   : > { %332 = vst [vmem:[%s208_s28] sm:$0xff] %v328_v46  ;;  %v331_v50 = vmul.f32 %v327_v48, %v299_v47  ;;  %v325_v52 = vadd.f32 1.0, %v487_v49 }
  0xf8   : > { %335 = vst [vmem:[%s208_s28 + $0x18] sm:$0xff] %v331_v50  ;;  %v329_v53 = vmul.f32 %v325_v52, %v297_v51 }
  0xfa   : > { %333 = vst [vmem:[%s208_s28 + $0x8] sm:$0xff] %v329_v53 }
  0xfb PF: > { %s13_s14 = sadd.s32 1, %s510_s14   ;;  %s585_s12 = smov %s506_s13 }
  0xfc   : > { %p10_p5 = scmp.ge.s32.totalorder %s13_s14, 4   ;;  %s586_s13 = smov %s588_s15 }
  0xfe   :  { %12 = sbr.rel (!%p10_p5) target bundleno = 2 (0x2), region = 62 }

// kernel: speech_tower_forward.14
= control target key start
LH: loop header
LB: loop body
LE: loop exit
PB: predicated region body
PF: predicated region fallthrough
CT: control target
= control target key end

     0   :  { %s876_s15 = smov 0   ;;  %s878_s16 = smov 0   ;;  %s1007_s0 = inlined_call_operand.vmem [shape: f32[2,16,384], index: 0, kind: input, shape index: {}]   ;;  %s1008_s1 = inlined_call_operand.vmem [shape: bf16[384,128], index: 1, kind: input, shape index: {}]   ;;  %s1009_s2 = inlined_call_operand.vmem [shape: f32[1,128], index: 2, kind: input, shape index: {}]   ;;  %s1010_s3 = inlined_call_operand.vmem [shape: f32[16,128], index: 3, kind: input, shape index: {}]   ;;  %s1011_s4 = inlined_call_operand.vmem [shape: f32[2,16,128], index: 4, kind: output, shape index: {}]  }
   0x1   :  { %s880_s17 = smov 0  }
   0x2 LB: > { %s26_s18 = sadd.s32 1, %s843_s16  ;;  %p687_p0 = scmp.ge.s32.totalorder %s847_s17, 1  ;;  %s847_s17 = sphi %s880_s17, %s14_s17   ;;  %s843_s16 = sphi %s878_s16, %s1013_s16   ;;  %s839_s15 = sphi %s876_s15, %s1012_s15  }
   0x3   : > { %p28_p1 = scmp.ge.s32.totalorder %s26_s18, 2  ;;  %p195_p2 = scmp.lt.s32.totalorder %s847_s17, 3 }
   0x5   : > { %s1015_s18 = smov (%p28_p1, %s26_s18), 0  ;;  %p196_p3 = pnand %p687_p0, %p195_p2 }
   0x6   : > { %p236_p4 = scmp.lt.s32.totalorder (!%p196_p3), %s839_s15, 1 }
   0x7   : > { %199 = sbr.rel (%p196_p3) target bundleno = 281 (0x119), region = 36 }
   0xc   : > { %v797_v0 = vld [vmem:[%s1008_s1 + $0x78] sm:$0xff]   ;;  %v849_v1 = vmov 0.0   ;;  %v800_v4 = vld [vmem:[%s1008_s1 + $0x70] sm:$0xff]   ;;  %vm850_vm0 = vmmov 0   ;;  %v803_v7 = vld [vmem:[%s1008_s1 + $0x68] sm:$0xff]   ;;  %s1017_s15 = smov (!%p236_p4, %s839_s15), 1 }
   0xd   : > { %750 = vmatprep.subr.bf16.mxu1 %v849_v1  ;;  %v798_v2 = vld [vmem:[%s1008_s1 + $0x38] sm:$0xff]   ;;  %719 = vmatprep.subr.bf16.mxu0 %v797_v0  ;;  %v801_v5 = vld [vmem:[%s1008_s1 + $0x30] sm:$0xff]   ;;  %v804_v8 = vld [vmem:[%s1008_s1 + $0x28] sm:$0xff]   ;;  %s770_s29 = smul.u32 48, %s1017_s15 }
   0xe   : > { %v799_v3 = vld [vmem:[%s1008_s1 + $0xb8] sm:$0xff]   ;;  %720 = vmatpush3.bf16.msra.mxu0 %v798_v2  ;;  %766 = vmatprep.mubr.msk.bf16.mxu1 %vm850_vm0, %v849_v1  ;;  %v802_v6 = vld [vmem:[%s1008_s1 + $0xb0] sm:$0xff]   ;;  %v805_v9 = vld [vmem:[%s1008_s1 + $0xa8] sm:$0xff]  }
   0xf   : > { %751 = vmatpush3.bf16.msra.mxu1 %v799_v3  ;;  %721 = vmatprep.subr.bf16.mxu0 %v800_v4  ;;  %v806_v10 = vld [vmem:[%s1008_s1 + $0x60] sm:$0xff]   ;;  %v809_v13 = vld [vmem:[%s1008_s1 + $0x58] sm:$0xff]   ;;  %v812_v16 = vld [vmem:[%s1008_s1 + $0x50] sm:$0xff]   ;;  %s244_s12 = scalar_lea.vmem %s1007_s0, %s770_s29  ;;  %s718_s29 = sshll.u32 %s1017_s15, 4 }
  0x10   : > { %752 = vmatprep.subr.bf16.mxu1 %v849_v1  ;;  %v807_v11 = vld [vmem:[%s1008_s1 + $0x20] sm:$0xff]   ;;  %v810_v14 = vld [vmem:[%s1008_s1 + $0x18] sm:$0xff]   ;;  %v813_v17 = vld [vmem:[%s1008_s1 + $0x10] sm:$0xff]   ;;  %s260_s8 = scalar_lea.vmem %s1011_s4, %s718_s29 }
  0x11   : > { %v808_v12 = vld [vmem:[%s1008_s1 + $0xa0] sm:$0xff]   ;;  %v811_v15 = vld [vmem:[%s1008_s1 + $0x98] sm:$0xff]   ;;  %v814_v18 = vld [vmem:[%s1008_s1 + $0x90] sm:$0xff]  }
  0x12   : > { %722 = vmatpush3.bf16.msra.mxu0 %v801_v5  ;;  %v815_v19 = vld [vmem:[%s1008_s1 + $0x48] sm:$0xff]   ;;  %v818_v22 = vld [vmem:[%s1008_s1 + $0x40] sm:$0xff]   ;;  %v266_v28 = vld [vmem:[%s244_s12 + $0x18] sm:$0xff] }
  0x13   : > { %753 = vmatpush3.bf16.msra.mxu1 %v802_v6  ;;  %723 = vmatprep.subr.bf16.mxu0 %v803_v7  ;;  %v816_v20 = vld [vmem:[%s1008_s1 + $0x8] sm:$0xff]   ;;  %v267_v24 = vld [vmem:[%s244_s12 + $0x20] sm:$0xff]  ;;  %v265_v30 = vld [vmem:[%s244_s12 + $0x10] sm:$0xff] }
  0x14   : > { %754 = vmatprep.subr.bf16.mxu1 %v849_v1  ;;  %v817_v21 = vld [vmem:[%s1008_s1 + $0x88] sm:$0xff]   ;;  %v819_v26 = vld [vmem:[%s1008_s1] sm:$0xff]  }
  0x15   : > { %v264_v23 = vld [vmem:[%s244_s12 + $0x8] sm:$0xff]  ;;  %v263_v27 = vld [vmem:[%s244_s12] sm:$0xff] }
  0x16   : > { %724 = vmatpush3.bf16.msra.mxu0 %v804_v8  ;;  %v270_v25 = vpack.c.bf16 %v267_v24, %v264_v23  ;;  %v820_v29 = vld [vmem:[%s1008_s1 + $0x80] sm:$0xff]   ;;  %v268_v31 = vld [vmem:[%s244_s12 + $0x28] sm:$0xff]  ;;  %v269_v32 = vpack.c.bf16 %v266_v28, %v263_v27 }
  0x17   : > { %755 = vmatpush3.bf16.msra.mxu1 %v805_v9  ;;  %725 = vmatprep.subr.bf16.mxu0 %v806_v10  ;;  %v271_v33 = vpack.c.bf16 %v268_v31, %v265_v30  ;;  %v691_v36 = vld [vmem:[%s1009_s2] ss:$0 sm:$0xff]  ;;  %v572_v4 = vld [vmem:[%s1010_s3 + $0x8] sm:$0xff] }
  0x18   : > { %756 = vmatprep.subr.bf16.mxu1 %v849_v1  ;;  %503 = vmatprep.mubr.bf16.mxu0 %v270_v25  ;;  %v571_v62 = vld [vmem:[%s1010_s3] sm:$0xff] }
  0x1a   : > { %726 = vmatpush3.bf16.msra.mxu0 %v807_v11 }
  0x1b   : > { %757 = vmatpush3.bf16.msra.mxu1 %v808_v12  ;;  %727 = vmatprep.subr.bf16.mxu0 %v809_v13 }
  0x1c   : > { %758 = vmatprep.subr.bf16.mxu1 %v849_v1 }
  0x1e   : > { %728 = vmatpush3.bf16.msra.mxu0 %v810_v14 }
  0x1f   : > { %759 = vmatpush3.bf16.msra.mxu1 %v811_v15  ;;  %729 = vmatprep.subr.bf16.mxu0 %v812_v16 }
  0x20   : > { %760 = vmatprep.subr.bf16.mxu1 %v849_v1 }
  0x22   : > { %730 = vmatpush3.bf16.msra.mxu0 %v813_v17 }
  0x23   : > { %761 = vmatpush3.bf16.msra.mxu1 %v814_v18  ;;  %731 = vmatprep.subr.bf16.mxu0 %v815_v19 }
  0x24   : > { %762 = vmatprep.subr.bf16.mxu1 %v849_v1 }
  0x26   : > { %732 = vmatpush3.bf16.msra.mxu0 %v816_v20 }
  0x27   : > { %763 = vmatpush3.bf16.msra.mxu1 %v817_v21  ;;  %733 = vmatprep.subr.bf16.mxu0 %v818_v22 }
  0x28   : > { %764 = vmatprep.subr.bf16.mxu1 %v849_v1 }
  0x2a   : > { %734 = vmatpush3.bf16.msra.mxu0 %v819_v26 }
  0x2b   : > { %765 = vmatpush3.bf16.msra.mxu1 %v820_v29 }
  0x2d   : > { %504 = vmatmul.mubr.bf16.vlgmr.msra.gmra.mxu0 %v269_v32 }
  0x2e   : > { %767 = vmatmul.mubr.bf16.vlgmr.msra.gmra.mxu1 %v271_v33 }
  0xed   : > { %v735_v34 = vpop.f32.mrf.mxu0 }
  0xee   : > { %v546_v35 = vpop.f32.mrf.mxu1 }
  0xef   : > { %v736_v37 = vpop.f32.mrf.mxu0 }
  0xf0   : > { %v737_v38 = vadd.f32 %v736_v37, %v735_v34  ;;  %v768_v39 = vpop.f32.mrf.mxu1 }
  0xf1   : > { %v738_v40 = vpop.f32.mrf.mxu0 }
  0xf2   : > { %v506_v41 = vadd.f32 %v737_v38, %v691_v36  ;;  %v549_v42 = vpop.f32.mrf.mxu1 }
  0xf3   : > { %v739_v43 = vpop.f32.mrf.mxu0 }
  0xf4   : > { %v547_v44 = vadd.f32 %v546_v35, %v506_v41  ;;  %v740_v45 = vadd.f32 %v739_v43, %v738_v40  ;;  %v769_v46 = vpop.f32.mrf.mxu1 }
  0xf6   : > { %v555_v47 = vmul.f32 0.044715, %v547_v44  ;;  %v509_v48 = vadd.f32 %v740_v45, %v691_v36  ;;  %v553_v60 = vmul.f32 0.5, %v547_v44 }
  0xf8   : > { %v557_v49 = vmul.f32 %v555_v47, %v547_v44  ;;  %v550_v50 = vadd.f32 %v549_v42, %v509_v48 }
  0xfa   : > { %v559_v51 = vmul.f32 %v557_v49, %v547_v44  ;;  %v556_v52 = vmul.f32 0.044715, %v550_v50  ;;  %v554_v2 = vmul.f32 0.5, %v550_v50 }
  0xfc   : > { %v561_v53 = vadd.f32 %v559_v51, %v547_v44  ;;  %v558_v54 = vmul.f32 %v556_v52, %v550_v50 }
  0xfe   : > { %v563_v55 = vmul.f32 0.7978846, %v561_v53  ;;  %v560_v56 = vmul.f32 %v558_v54, %v550_v50 }
 0x100   : > { %821 = vtanh.f32 %v563_v55  ;;  %v562_v57 = vadd.f32 %v560_v56, %v550_v50 }
 0x102   : > { %v564_v58 = vmul.f32 0.7978846, %v562_v57 }
 0x104   : > { %823 = vtanh.f32 %v564_v58 }
 0x10d   : > { %v822_v59 = vpop.eup %821 }
 0x10e   : > { %v567_v61 = vadd.f32 1.0, %v822_v59 }
 0x110   : > { %v569_v63 = vmul.f32 %v567_v61, %v553_v60 }
 0x111   : > { %v824_v0 = vpop.eup %823 }
 0x112   : > { %v573_v1 = vadd.f32 %v571_v62, %v569_v63  ;;  %v568_v3 = vadd.f32 1.0, %v824_v0 }
 0x114   : > { %575 = vst [vmem:[%s260_s8] sm:$0xff] %v573_v1  ;;  %v570_v5 = vmul.f32 %v568_v3, %v554_v2 }
 0x116   : > { %v574_v6 = vadd.f32 %v572_v4, %v570_v5 }
 0x118   : > { %576 = vst [vmem:[%s260_s8 + $0x8] sm:$0xff] %v574_v6 }
 0x119 PF: > { %s14_s17 = sadd.s32 1, %s847_s17   ;;  %s1012_s15 = smov %s843_s16 }
 0x11a   : > { %p11_p5 = scmp.ge.s32.totalorder %s14_s17, 4   ;;  %s1013_s16 = smov %s1015_s18 }
 0x11c   :  { %13 = sbr.rel (!%p11_p5) target bundleno = 2 (0x2), region = 69 }

// kernel: speech_tower_forward.15
= control target key start
LH: loop header
LB: loop body
LE: loop exit
PB: predicated region body
PF: predicated region fallthrough
CT: control target
= control target key end

     0   :  { %v538_v39 = vmov 0   ;;  %s706_s0 = inlined_call_operand.vmem [shape: f32[32,128], index: 0, kind: input, shape index: {}]   ;;  %s707_s3 = inlined_call_operand.vmem [shape: bf16[128,384], index: 3, kind: input, shape index: {}]   ;;  %s708_s1 = inlined_call_operand.vmem [shape: f32[1,128], index: 1, kind: input, shape index: {}]   ;;  %s709_s2 = inlined_call_operand.vmem [shape: f32[1,128], index: 2, kind: input, shape index: {}]   ;;  %s710_s4 = inlined_call_operand.vmem [shape: f32[1,384], index: 4, kind: input, shape index: {}]   ;;  %s711_s5 = inlined_call_operand.vmem [shape: bf16[32,384], index: 5, kind: output, shape index: {}]  }
   0x1   :  { %v21_v0 = vld [vmem:[%s706_s0] sm:$0xff]  ;;  %v23_v1 = vld [vmem:[%s706_s0 + $0x10] sm:$0xff]  ;;  %v22_v2 = vld [vmem:[%s706_s0 + $0x8] sm:$0xff]  ;;  %303 = vmatprep.mubr.bf16.mxu0 %v538_v39 }
   0x2   :  { %27 = vadd.xlane.f32.xlu0 %v21_v0  ;;  %31 = vadd.xlane.f32.xlu1 %v23_v1  ;;  %v24_v3 = vld [vmem:[%s706_s0 + $0x18] sm:$0xff]  ;;  %v500_v5 = vld [vmem:[%s707_s3 + $0xa8] ss:$12 sps:$4 sm:$0xff]   ;;  %v509_v28 = vld [vmem:[%s707_s3 + $0x64] ss:$12 sps:$4 sm:$0xff]  }
   0x3   :  { %v498_v4 = vld [vmem:[%s707_s3 + $0xac] ss:$12 sps:$4 sm:$0xff]   ;;  %v501_v22 = vld [vmem:[%s707_s3 + $0x94] ss:$12 sps:$4 sm:$0xff]   ;;  %v503_v23 = vld [vmem:[%s707_s3 + $0xb0] ss:$12 sps:$4 sm:$0xff]  }
   0x4   :  { %271 = vmatprep.subr.bf16.mxu0 %v498_v4  ;;  %v504_v24 = vld [vmem:[%s707_s3 + $0x90] ss:$12 sps:$4 sm:$0xff]   ;;  %477 = vmatprep.subr.bf16.mxu1 %v503_v23  ;;  %v507_v26 = vld [vmem:[%s707_s3 + $0x98] ss:$12 sps:$4 sm:$0xff]   ;;  %v511_v29 = vld [vmem:[%s707_s3 + $0x80] ss:$12 sps:$4 sm:$0xff]  }
   0x5   :  { %272 = vmatpush1.bf16.msra.mxu0 %v500_v5  ;;  %478 = vmatpush3.bf16.msra.mxu1 %v503_v23  ;;  %v505_v25 = vld [vmem:[%s707_s3 + $0x7c] ss:$12 sps:$4 sm:$0xff]   ;;  %v508_v27 = vld [vmem:[%s707_s3 + $0x78] ss:$12 sps:$4 sm:$0xff]   ;;  %v512_v30 = vld [vmem:[%s707_s3 + $0x60] ss:$12 sps:$4 sm:$0xff]  }
   0x6   :  { %29 = vadd.xlane.f32.xlu0 %v22_v2  ;;  %33 = vadd.xlane.f32.xlu1 %v24_v3  ;;  %v513_v31 = vld [vmem:[%s707_s3 + $0x4c] ss:$12 sps:$4 sm:$0xff]   ;;  %v515_v32 = vld [vmem:[%s707_s3 + $0x68] ss:$12 sps:$4 sm:$0xff]   ;;  %v519_v35 = vld [vmem:[%s707_s3 + $0x50] ss:$12 sps:$4 sm:$0xff]  }
   0x7   :  { %273 = vmatprep.subr.bf16.mxu0 %v501_v22  ;;  %479 = vmatprep.subr.bf16.mxu1 %v507_v26  ;;  %v516_v33 = vld [vmem:[%s707_s3 + $0x48] ss:$12 sps:$4 sm:$0xff]   ;;  %v520_v36 = vld [vmem:[%s707_s3 + $0x30] ss:$12 sps:$4 sm:$0xff]   ;;  %v523_v38 = vld [vmem:[%s707_s3 + $0x38] ss:$12 sps:$4 sm:$0xff]  }
   0x8   :  { %v517_v34 = vld [vmem:[%s707_s3 + $0x34] ss:$12 sps:$4 sm:$0xff]   ;;  %v521_v37 = vld [vmem:[%s707_s3 + $0x1c] ss:$12 sps:$4 sm:$0xff]   ;;  %v524_v40 = vld [vmem:[%s707_s3 + $0x18] ss:$12 sps:$4 sm:$0xff]  }
   0x9   :  { %274 = vmatpush1.bf16.msra.mxu0 %v504_v24  ;;  %480 = vmatpush3.bf16.msra.mxu1 %v507_v26  ;;  %v525_v41 = vld [vmem:[%s707_s3 + $0x4] ss:$12 sps:$4 sm:$0xff]   ;;  %v527_v42 = vld [vmem:[%s707_s3 + $0x20] ss:$12 sps:$4 sm:$0xff]   ;;  %v529_v44 = vld [vmem:[%s707_s3 + $0x8] ss:$12 sps:$4 sm:$0xff]  }
   0xa   :  { %275 = vmatprep.subr.bf16.mxu0 %v505_v25  ;;  %481 = vmatprep.subr.bf16.mxu1 %v511_v29  ;;  %v528_v43 = vld [vmem:[%s707_s3] ss:$12 sps:$4 sm:$0xff]  }
   0xb   :  { %v425_v59 = vld [vmem:[%s708_s1] ss:$0 sm:$0xff] }
   0xd   :  { %276 = vmatpush1.bf16.msra.mxu0 %v508_v27  ;;  %482 = vmatpush3.bf16.msra.mxu1 %v511_v29 }
   0xe   :  { %277 = vmatprep.subr.bf16.mxu0 %v509_v28  ;;  %483 = vmatprep.subr.bf16.mxu1 %v515_v32 }
  0x11   :  { %278 = vmatpush1.bf16.msra.mxu0 %v512_v30  ;;  %484 = vmatpush3.bf16.msra.mxu1 %v515_v32 }
  0x12   :  { %279 = vmatprep.subr.bf16.mxu0 %v513_v31  ;;  %485 = vmatprep.subr.bf16.mxu1 %v519_v35 }
  0x15   :  { %280 = vmatpush1.bf16.msra.mxu0 %v516_v33  ;;  %486 = vmatpush3.bf16.msra.mxu1 %v519_v35 }
  0x16   :  { %281 = vmatprep.subr.bf16.mxu0 %v517_v34  ;;  %487 = vmatprep.subr.bf16.mxu1 %v523_v38 }
  0x19   :  { %282 = vmatpush1.bf16.msra.mxu0 %v520_v36  ;;  %488 = vmatpush3.bf16.msra.mxu1 %v523_v38 }
  0x1a   :  { %283 = vmatprep.subr.bf16.mxu0 %v521_v37  ;;  %489 = vmatprep.subr.bf16.mxu1 %v527_v42 }
  0x1d   :  { %284 = vmatpush1.bf16.msra.mxu0 %v524_v40  ;;  %490 = vmatpush3.bf16.msra.mxu1 %v527_v42 }
  0x1e   :  { %285 = vmatprep.subr.bf16.mxu0 %v525_v41  ;;  %491 = vmatprep.subr.bf16.mxu1 %v529_v44 }
  0x21   :  { %286 = vmatpush1.bf16.msra.mxu0 %v528_v43  ;;  %492 = vmatpush3.bf16.msra.mxu1 %v529_v44 }
  0x8b   :  { %v28_v6 = vpop.xlane.xlu0 %27  ;;  %v32_v7 = vpop.xlane.xlu1 %31 }
  0x8c   :  { %v36_v8 = vmul.f32 0.0078125, %v28_v6  ;;  %v38_v9 = vmul.f32 0.0078125, %v32_v7 }
  0x8e   :  { %v587_v10 = vsub.f32 %v21_v0, %v36_v8  ;;  %v589_v11 = vsub.f32 %v23_v1, %v38_v9  ;;  %v426_v0 = vld [vmem:[%s709_s2] ss:$0 sm:$0xff] }
  0x8f   :  { %v30_v12 = vpop.xlane.xlu0 %29  ;;  %v34_v13 = vpop.xlane.xlu1 %33 }
  0x90   :  { %v37_v14 = vmul.f32 0.0078125, %v30_v12  ;;  %v44_v15 = vmul.f32 %v587_v10, %v587_v10  ;;  %v39_v16 = vmul.f32 0.0078125, %v34_v13  ;;  %v46_v19 = vmul.f32 %v589_v11, %v589_v11 }
  0x92   :  { %v593_v17 = vsub.f32 %v22_v2, %v37_v14  ;;  %48 = vadd.xlane.f32.xlu0 %v44_v15  ;;  %v595_v18 = vsub.f32 %v24_v3, %v39_v16  ;;  %v128_v14 = vlaneseq }
  0x94   :  { %v45_v20 = vmul.f32 %v593_v17, %v593_v17  ;;  %v47_v21 = vmul.f32 %v595_v18, %v595_v18  ;;  %v129_v15 = vshrl.u32 %v128_v14, 7 }
  0x96   :  { %52 = vadd.xlane.f32.xlu0 %v46_v19  ;;  %50 = vadd.xlane.f32.xlu1 %v45_v20  ;;  %v134_v16 = vsub.s32 1, %v129_v15 }
  0x9a   :  { %54 = vadd.xlane.f32.xlu1 %v47_v21 }
 0x11b   :  { %v49_v45 = vpop.xlane.xlu0 %48 }
 0x11c   :  { %v56_v46 = vmul.f32 0.0078125, %v49_v45 }
 0x11e   :  { %v60_v47 = vadd.f32 1e-05, %v56_v46 }
 0x11f   :  { %v51_v48 = vpop.xlane.xlu1 %50  ;;  %v53_v49 = vpop.xlane.xlu0 %52 }
 0x120   :  { %530 = vrsqrt.f32 %v60_v47  ;;  %v57_v50 = vmul.f32 0.0078125, %v51_v48  ;;  %v58_v51 = vmul.f32 0.0078125, %v53_v49 }
 0x122   :  { %v61_v52 = vadd.f32 1e-05, %v57_v50  ;;  %v62_v53 = vadd.f32 1e-05, %v58_v51 }
 0x123   :  { %v55_v54 = vpop.xlane.xlu1 %54 }
 0x124   :  { %532 = vrsqrt.f32 %v61_v52  ;;  %v59_v55 = vmul.f32 0.0078125, %v55_v54 }
 0x125   :  { %534 = vrsqrt.f32 %v62_v53 }
 0x126   :  { %v63_v56 = vadd.f32 1e-05, %v59_v55 }
 0x128   :  { %536 = vrsqrt.f32 %v63_v56 }
 0x12d   :  { %v531_v57 = vpop.eup %530 }
 0x12e   :  { %v68_v58 = vmul.f32 %v531_v57, %v587_v10 }
 0x130   :  { %v78_v63 = vmul.f32 %v425_v59, %v68_v58 }
 0x131   :  { %v533_v60 = vpop.eup %532 }
 0x132   :  { %v535_v61 = vpop.eup %534  ;;  %v69_v62 = vmul.f32 %v533_v60, %v593_v17  ;;  %v88_v4 = vadd.f32 %v426_v0, %v78_v63  ;;  %v126_v17 = vld [vmem:[%s710_s4] sm:$0x7] }
 0x133   :  { %v70_v1 = vmul.f32 %v535_v61, %v589_v11  ;;  %v130_v11 = vsub.s32 0, %v129_v15  ;;  %v135_v20 = vrot.slane %v126_v17, %v134_v16 }
 0x134   :  { %v79_v2 = vmul.f32 %v425_v59, %v69_v62 }
 0x135   :  { %v537_v3 = vpop.eup %536  ;;  %v80_v7 = vmul.f32 %v425_v59, %v70_v1  ;;  %v131_v19 = vrot.slane %v126_v17, %v130_v11 }
 0x136   :  { %v89_v5 = vadd.f32 %v426_v0, %v79_v2  ;;  %v71_v6 = vmul.f32 %v537_v3, %v595_v18  ;;  %v138_v18 = vsub.s32 2, %v129_v15 }
 0x137   :  { %v90_v10 = vadd.f32 %v426_v0, %v80_v7 }
 0x138   :  { %v92_v8 = vpack.c.bf16 %v89_v5, %v88_v4  ;;  %v81_v9 = vmul.f32 %v425_v59, %v71_v6  ;;  %v139_v22 = vrot.slane %v126_v17, %v138_v18 }
 0x13a   :  { %304 = vmatmul.mubr.bf16.vlgmr.msra.gmra.mxu0 %v92_v8  ;;  %493 = vmatprep.mubr.bf16.mxu1 %v92_v8  ;;  %v91_v12 = vadd.f32 %v426_v0, %v81_v9 }
 0x13b   :  { %313 = vmatprep.mubr.bf16.mxu0 %v538_v39 }
 0x13c   :  { %v93_v13 = vpack.c.bf16 %v91_v12, %v90_v10 }
 0x13e   :  { %494 = vmatmul.mubr.bf16.vlgmr.msra.gmra.mxu1 %v93_v13 }
 0x142   :  { %314 = vmatmul.mubr.bf16.gmra.mxu0 %v93_v13 }
 0x1fa   :  { %v305_v21 = vpop.f32.mrf.mxu0 }
 0x1fb   :  { %v306_v24 = vadd.f32 %v305_v21, %v131_v19 }
 0x1fc   :  { %v307_v23 = vpop.f32.mrf.mxu0 }
 0x1fd   :  { %v308_v25 = vadd.f32 %v307_v23, %v135_v20 }
 0x1fe   :  { %v309_v26 = vpop.f32.mrf.mxu0  ;;  %v495_v27 = vpop.f32.mrf.mxu1 }
 0x1ff   :  { %v459_v28 = vpack.c.bf16 %v308_v25, %v306_v24  ;;  %v367_v29 = vadd.f32 %v495_v27, %v139_v22  ;;  %v310_v32 = vadd.f32 %v309_v26, %v131_v19 }
 0x200   :  { %v311_v30 = vpop.f32.mrf.mxu0  ;;  %v358_v31 = vpop.f32.mrf.mxu1 }
 0x201   :  { %413 = vst [vmem:[%s711_s5] sm:$0xff] %v459_v28  ;;  %v464_v33 = vpack.c.bf16 %v367_v29, %v367_v29  ;;  %v312_v34 = vadd.f32 %v311_v30, %v135_v20  ;;  %v359_v35 = vadd.f32 %v358_v31, %v139_v22 }
 0x202   :  { %v315_v36 = vpop.f32.mrf.mxu0  ;;  %v496_v37 = vpop.f32.mrf.mxu1 }
 0x203   :  { %418 = vst [vmem:[%s711_s5 + $0x20] sm:$0xf] %v464_v33  ;;  %v461_v38 = vpack.c.bf16 %v312_v34, %v310_v32  ;;  %v460_v39 = vpack.c.bf16 %v359_v35, %v359_v35  ;;  %v370_v40 = vadd.f32 %v496_v37, %v139_v22  ;;  %v316_v43 = vadd.f32 %v315_v36, %v131_v19 }
 0x204   :  { %v317_v41 = vpop.f32.mrf.mxu0  ;;  %v361_v42 = vpop.f32.mrf.mxu1 }
 0x205   :  { %415 = vst [vmem:[%s711_s5 + $0xc] sm:$0xff] %v461_v38  ;;  %414 = vst [vmem:[%s711_s5 + $0x8] sm:$0xf] %v460_v39  ;;  %v466_v44 = vpack.c.bf16 %v370_v40, %v370_v40  ;;  %v318_v45 = vadd.f32 %v317_v41, %v135_v20  ;;  %v362_v46 = vadd.f32 %v361_v42, %v139_v22 }
 0x206   :  { %v319_v47 = vpop.f32.mrf.mxu0 }
 0x207   :  { %420 = vst [vmem:[%s711_s5 + $0x2c] sm:$0xf] %v466_v44  ;;  %v463_v48 = vpack.c.bf16 %v318_v45, %v316_v43  ;;  %v462_v49 = vpack.c.bf16 %v362_v46, %v362_v46  ;;  %v320_v51 = vadd.f32 %v319_v47, %v131_v19 }
 0x208   :  { %v321_v50 = vpop.f32.mrf.mxu0 }
 0x209   :  { %417 = vst [vmem:[%s711_s5 + $0x18] sm:$0xff] %v463_v48  ;;  %416 = vst [vmem:[%s711_s5 + $0x14] sm:$0xf] %v462_v49  ;;  %v322_v52 = vadd.f32 %v321_v50, %v135_v20 }
 0x20b   :  { %v465_v53 = vpack.c.bf16 %v322_v52, %v320_v51 }
 0x20d   :  { %419 = vst [vmem:[%s711_s5 + $0x24] sm:$0xff] %v465_v53 }

// kernel: speech_tower_forward.16
= control target key start
LH: loop header
LB: loop body
LE: loop exit
PB: predicated region body
PF: predicated region fallthrough
CT: control target
= control target key end

     0   :  { %s911_s12 = smov 0   ;;  %s913_s13 = smov 0   ;;  %s993_s0 = inlined_call_operand.vmem [shape: bf16[2,2,16,64], index: 0, kind: input, shape index: {}]   ;;  %s994_s1 = inlined_call_operand.vmem [shape: bf16[2,2,16,64], index: 1, kind: input, shape index: {}]   ;;  %s995_s2 = inlined_call_operand.vmem [shape: bf16[2,2,16,64], index: 2, kind: input, shape index: {}]   ;;  %s996_s3 = inlined_call_operand.vmem [shape: bf16[2,2,16,64], index: 3, kind: output, shape index: {}]  }
   0x1   :  { %s915_s14 = smov 0   ;;  %s917_s15 = smov 0  }
   0x2   :  { %s919_s16 = smov 0  }
   0x3 LB: > { %s35_s17 = sadd.s32 1, %s877_s14  ;;  %s39_s18 = sadd.s32 1, %s881_s15  ;;  %s885_s16 = sphi %s919_s16, %s13_s16   ;;  %s881_s15 = sphi %s917_s15, %s1000_s15   ;;  %s877_s14 = sphi %s915_s14, %s999_s14   ;;  %s873_s13 = sphi %s913_s13, %s998_s13   ;;  %s869_s12 = sphi %s911_s12, %s997_s12  }
   0x4   : > { %p37_p0 = scmp.ge.s32.totalorder %s35_s17, 2  ;;  %p746_p1 = scmp.ge.s32.totalorder %s885_s16, 1 }
   0x5   : > { %p226_p2 = scmp.lt.s32.totalorder %s885_s16, 5 }
   0x6   : > { %s1002_s17 = smov (%p37_p0, %s35_s17), 0  ;;  %s1004_s18 = smov (!%p37_p0, %s39_s18), %s881_s15 }
   0x7   : > { %p227_p3 = pnand %p746_p1, %p226_p2  ;;  %p41_p4 = scmp.ge.s32.totalorder %s1004_s18, 2 }
   0x8   : > { %p293_p5 = scmp.lt.s32.totalorder (!%p227_p3), %s873_s13, 1  ;;  %p295_p6 = scmp.lt.s32.totalorder (!%p227_p3), %s869_s12, 1 }
   0x9   : > { %s1006_s18 = smov (%p41_p4, %s1004_s18), 0  ;;  %230 = sbr.rel (%p227_p3) target bundleno = 800 (0x320), region = 32 }
   0xe   : > { %vm358_vm0 = vcmask 523264   ;;  %v887_v0 = vmov 0.0   ;;  %vm888_vm1 = vmmov 0   ;;  %s1008_s13 = smov (!%p293_p5, %s873_s13), 1  ;;  %s1010_s12 = smov (!%p295_p6, %s869_s12), 1  ;;  %vm353_vm2 = vcmask 7168  }
   0xf   : > { %774 = vmatprep.subr.bf16.mxu0 %v887_v0  ;;  %359 = vst.msk [vmem:[#allocation4] sm:$0xff] %vm358_vm0, %v887_v0  ;;  %360 = vst.msk [vmem:[#allocation4 + $0x8] sm:$0xff] %vm358_vm0, %v887_v0  ;;  %776 = vmatprep.mubr.msk.bf16.mxu0 %vm888_vm1, %v887_v0  ;;  %s748_s19 = sshll.u32 %s1008_s13, 2  ;;  %s747_s20 = sshll.u32 %s1010_s12, 1  ;;  %v889_v4 = vmov -inf   ;;  %vm425_vm3 = vcmask 130048  }
  0x10   : > { %780 = vmatprep.subr.bf16.mxu1 %v887_v0  ;;  %782 = vmatprep.mubr.msk.bf16.mxu1 %vm888_vm1, %v887_v0  ;;  %s302_s21 = sadd.s32 %s748_s19, %s747_s20  ;;  %354 = vst.msk [vmem:[#allocation2] sm:$0xff] %vm353_vm2, %v889_v4  ;;  %355 = vst.msk [vmem:[#allocation2 + $0x8] sm:$0xff] %vm353_vm2, %v889_v4  ;;  %v890_v11 = vmov 0   ;;  %vm573_vm4 = vcmask 519168  }
  0x11   : > { %s943_s22 = sshll.u32 %s302_s21, 2  ;;  %356 = vst.msk [vmem:[#allocation3] sm:$0xff] %vm353_vm2, %v887_v0  ;;  %357 = vst.msk [vmem:[#allocation3 + $0x8] sm:$0xff] %vm353_vm2, %v887_v0  ;;  %830 = vset.pattern.permute.xlu1 %v890_v11  ;;  %831 = vset.pattern.permute.xlu0 %v890_v11 }
  0x12   : > { %s318_s25 = scalar_lea.vmem %s994_s1, %s943_s22  ;;  %s304_s28 = scalar_lea.vmem %s993_s0, %s943_s22 }
  0x13   : > { %v832_v1 = vld [vmem:[%s318_s25] sm:$0xff]   ;;  %s332_s4 = scalar_lea.vmem %s995_s2, %s943_s22  ;;  %s346_s7 = scalar_lea.vmem %s996_s3, %s943_s22 }
  0x14   : > { %v380_v2 = vsel %vm358_vm0, %v832_v1, 0  ;;  %v833_v3 = vld [vmem:[%s304_s28] sm:$0xff]  }
  0x15   : > { %775 = vmatpush3.bf16.xpose.msra.mxu0 %v380_v2  ;;  %v834_v20 = vld [vmem:[%s332_s4] sm:$0xff]  }
  0x16   : > { %781 = vmatpush3.bf16.msra.mxu1 %v834_v20  ;;  %v471_v48 = vld [vmem:[#allocation4] sm:$0xff]  ;;  %v472_v51 = vld [vmem:[#allocation4 + $0x8] sm:$0xff] }
  0x17   : > { %v423_v12 = vld [vmem:[#allocation2] sm:$0xff]  ;;  %v424_v15 = vld [vmem:[#allocation2 + $0x8] sm:$0xff] }
  0x18   : > { %v456_v36 = vld [vmem:[#allocation3] sm:$0xff]  ;;  %v457_v39 = vld [vmem:[#allocation3 + $0x8] sm:$0xff] }
  0x1c   : > { %777 = vmatmul.mubr.msk.bf16.vlgmr.msra.gmra.mxu0 %vm358_vm0, %v833_v3 }
  0xdc   : > { %v416_v5 = vpop.f32.mrf.mxu0 }
  0xdd   : > { %v426_v6 = vsel %vm425_vm3, %v416_v5, -inf }
  0xde   : > { %427 = vmax.xlane.f32.xlu0 %v426_v6  ;;  %v778_v7 = vpop.f32.mrf.mxu0 }
  0xe0   : > { %v419_v8 = vpop.f32.mrf.mxu0 }
  0xe1   : > { %v429_v9 = vsel %vm425_vm3, %v419_v8, -inf }
  0xe2   : > { %430 = vmax.xlane.f32.xlu0 %v429_v9  ;;  %v779_v10 = vpop.f32.mrf.mxu0 }
 0x167   : > { %v428_v13 = vpop.xlane.xlu0 %427 }
 0x168   : > { %v432_v14 = vmax.f32 %v423_v12, %v428_v13 }
 0x16a   : > { %v434_v16 = vsub.f32 %v423_v12, %v432_v14  ;;  %542 = vst.msk [vmem:[#allocation2] sm:$0xff] %vm353_vm2, %v432_v14  ;;  %442 = vperm.xlu1 %830, %v432_v14  }
 0x16b   : > { %v431_v17 = vpop.xlane.xlu0 %430 }
 0x16c   : > { %v433_v18 = vmax.f32 %v424_v15, %v431_v17  ;;  %v436_v33 = vmul.f32 1.442695, %v434_v16 }
 0x16e   : > { %v435_v19 = vsub.f32 %v424_v15, %v433_v18  ;;  %543 = vst.msk [vmem:[#allocation2 + $0x8] sm:$0xff] %vm353_vm2, %v433_v18  ;;  %447 = vperm.xlu1 %830, %v433_v18  }
 0x170   : > { %v438_v30 = vmul.f32 1.442695, %v435_v19 }
 0x1e5   : > { %v443_v21 = vpop.permute.xlu1 %442 }
 0x1e6   : > { %v450_v22 = vsub.f32 %v416_v5, %v443_v21 }
 0x1e8   : > { %v452_v23 = vmul.f32 1.442695, %v450_v22 }
 0x1e9   : > { %v448_v24 = vpop.permute.xlu1 %447 }
 0x1ea   : > { %835 = vpow2.f32 %v452_v23  ;;  %v451_v25 = vsub.f32 %v419_v8, %v448_v24 }
 0x1ec   : > { %v454_v26 = vmul.f32 1.442695, %v451_v25 }
 0x1ee   : > { %837 = vpow2.f32 %v454_v26 }
 0x1ef   : > { %839 = vpow2.f32 %v438_v30 }
 0x1f0   : > { %841 = vpow2.f32 %v436_v33 }
 0x1f7   : > { %v836_v27 = vpop.eup %835 }
 0x1f8   : > { %v460_v28 = vsel %vm425_vm3, %v836_v27, 0.0 }
 0x1f9   : > { %461 = vadd.xlane.f32.xlu0 %v460_v28 }
 0x1fb   : > { %v838_v29 = vpop.eup %837 }
 0x1fc   : > { %v463_v31 = vsel %vm425_vm3, %v838_v29, 0.0  ;;  %v485_v32 = vpack.c.bf16 %v838_v29, %v836_v27  ;;  %v840_v34 = vpop.eup %839 }
 0x1fd   : > { %464 = vadd.xlane.f32.xlu1 %v463_v31  ;;  %v842_v35 = vpop.eup %841  ;;  %v459_v41 = vmul.f32 %v840_v34, %v457_v39 }
 0x1fe   : > { %783 = vmatmul.mubr.msk.bf16.vlgmr.msra.gmra.mxu1 %vm425_vm3, %v485_v32  ;;  %v458_v37 = vmul.f32 %v842_v35, %v456_v36 }
 0x20e   : > { %480 = vperm.xlu1 %830, %v840_v34  }
 0x20f   : > { %475 = vperm.xlu0 %831, %v842_v35  }
 0x282   : > { %v462_v38 = vpop.xlane.xlu0 %461 }
 0x283   : > { %v466_v40 = vadd.f32 %v462_v38, %v458_v37 }
 0x285   : > { %469 = vst.msk [vmem:[#allocation3] sm:$0xff] %vm353_vm2, %v466_v40 }
 0x286   : > { %v465_v42 = vpop.xlane.xlu1 %464 }
 0x287   : > { %v467_v43 = vadd.f32 %v465_v42, %v459_v41 }
 0x289   : > { %470 = vst.msk [vmem:[#allocation3 + $0x8] sm:$0xff] %vm353_vm2, %v467_v43 }
 0x28a   : > { %v476_v49 = vpop.permute.xlu0 %475  ;;  %v481_v52 = vpop.permute.xlu1 %480 }
 0x28b   : > { %v483_v50 = vmul.f32 %v476_v49, %v471_v48  ;;  %v484_v56 = vmul.f32 %v481_v52, %v472_v51 }
 0x28c   : > { %v549_v44 = vld [vmem:[#allocation3] sm:$0xff] }
 0x28d   : > { %843 = vrcp.f32 %v549_v44 }
 0x290   : > { %v550_v45 = vld [vmem:[#allocation3 + $0x8] sm:$0xff] }
 0x291   : > { %845 = vrcp.f32 %v550_v45 }
 0x29a   : > { %v844_v46 = vpop.eup %843 }
 0x29b   : > { %555 = vperm.xlu0 %831, %v844_v46  }
 0x29e   : > { %v846_v47 = vpop.eup %845 }
 0x29f   : > { %560 = vperm.xlu0 %831, %v846_v47  }
 0x2be   : > { %v531_v53 = vpop.f32.mrf.mxu1 }
 0x2bf   : > { %v538_v54 = vadd.f32 %v531_v53, %v483_v50 }
 0x2c0   : > { %v784_v55 = vpop.f32.mrf.mxu1 }
 0x2c1   : > { %540 = vst.msk [vmem:[#allocation4] sm:$0xff] %vm358_vm0, %v538_v54 }
 0x2c2   : > { %v534_v57 = vpop.f32.mrf.mxu1 }
 0x2c3   : > { %v539_v58 = vadd.f32 %v534_v57, %v484_v56 }
 0x2c4   : > { %v785_v59 = vpop.f32.mrf.mxu1 }
 0x2c5   : > { %541 = vst.msk [vmem:[#allocation4 + $0x8] sm:$0xff] %vm358_vm0, %v539_v58 }
 0x2c8   : > { %v547_v60 = vld [vmem:[#allocation4] sm:$0xff] }
 0x2cc   : > { %v548_v0 = vld [vmem:[#allocation4 + $0x8] sm:$0xff] }
 0x316   : > { %v556_v61 = vpop.permute.xlu0 %555 }
 0x317   : > { %v563_v62 = vmul.f32 %v556_v61, %v547_v60 }
 0x319   : > { %v768_v63 = vpack.c.bf16 %v563_v62, %v563_v62 }
 0x31a   : > { %v561_v1 = vpop.permute.xlu0 %560 }
 0x31b   : > { %574 = vst.msk [vmem:[%s346_s7] sm:$0xf] %vm573_vm4, %v768_v63  ;;  %v564_v2 = vmul.f32 %v561_v1, %v548_v0 }
 0x31d   : > { %v769_v3 = vpack.c.bf16 %v564_v2, %v564_v2 }
 0x31f   : > { %575 = vst.msk [vmem:[%s346_s7 + $0x4] sm:$0xf] %vm573_vm4, %v769_v3 }
 0x320 PF: > { %s13_s16 = sadd.s32 1, %s885_s16   ;;  %s997_s12 = smov %s877_s14 }
 0x321   : > { %p10_p7 = scmp.ge.s32.totalorder %s13_s16, 6   ;;  %s998_s13 = smov %s881_s15 }
 0x322   : > { %s999_s14 = smov %s1002_s17  ;;  %s1000_s15 = smov %s1006_s18 }
 0x323   :  { %12 = sbr.rel (!%p10_p7) target bundleno = 3 (0x3), region = 76 }

// kernel: speech_tower_forward.18
= control target key start
LH: loop header
LB: loop body
LE: loop exit
PB: predicated region body
PF: predicated region fallthrough
CT: control target
= control target key end

     0   :  { %v450_v31 = vmov 0   ;;  %s631_s0 = inlined_call_operand.vmem [shape: f32[32,128], index: 0, kind: input, shape index: {}]   ;;  %s632_s3 = inlined_call_operand.vmem [shape: bf16[128,256], index: 3, kind: input, shape index: {}]   ;;  %s633_s1 = inlined_call_operand.vmem [shape: f32[1,128], index: 1, kind: input, shape index: {}]   ;;  %s634_s2 = inlined_call_operand.vmem [shape: f32[1,128], index: 2, kind: input, shape index: {}]   ;;  %s635_s4 = inlined_call_operand.vmem [shape: f32[1,256], index: 4, kind: input, shape index: {}]   ;;  %s636_s5 = inlined_call_operand.vmem [shape: bf16[32,256], index: 5, kind: output, shape index: {}]  }
   0x1   :  { %v21_v0 = vld [vmem:[%s631_s0] sm:$0xff]  ;;  %v23_v1 = vld [vmem:[%s631_s0 + $0x10] sm:$0xff]  ;;  %v22_v2 = vld [vmem:[%s631_s0 + $0x8] sm:$0xff]  ;;  %234 = vmatprep.mubr.bf16.mxu0 %v450_v31  ;;  %244 = vmatprep.mubr.bf16.mxu1 %v450_v31 }
   0x2   :  { %27 = vadd.xlane.f32.xlu0 %v21_v0  ;;  %31 = vadd.xlane.f32.xlu1 %v23_v1  ;;  %v24_v3 = vld [vmem:[%s631_s0 + $0x18] sm:$0xff]  ;;  %v405_v22 = vld [vmem:[%s632_s3 + $0x64] ss:$8 sps:$4 sm:$0xff]   ;;  %v407_v23 = vld [vmem:[%s632_s3 + $0x60] ss:$8 sps:$4 sm:$0xff]  }
   0x3   :  { %v402_v4 = vld [vmem:[%s632_s3 + $0x74] ss:$8 sps:$4 sm:$0xff]   ;;  %v404_v5 = vld [vmem:[%s632_s3 + $0x70] ss:$8 sps:$4 sm:$0xff]   ;;  %v411_v26 = vld [vmem:[%s632_s3 + $0x44] ss:$8 sps:$4 sm:$0xff]  }
   0x4   :  { %202 = vmatprep.subr.bf16.mxu0 %v402_v4  ;;  %385 = vmatprep.subr.bf16.mxu1 %v402_v4  ;;  %v408_v24 = vld [vmem:[%s632_s3 + $0x54] ss:$8 sps:$4 sm:$0xff]   ;;  %v410_v25 = vld [vmem:[%s632_s3 + $0x50] ss:$8 sps:$4 sm:$0xff]   ;;  %v413_v27 = vld [vmem:[%s632_s3 + $0x40] ss:$8 sps:$4 sm:$0xff]  }
   0x5   :  { %203 = vmatpush1.bf16.msra.mxu0 %v404_v5  ;;  %393 = vmatpush1.bf16.msra.mxu1 %v404_v5  ;;  %v414_v28 = vld [vmem:[%s632_s3 + $0x34] ss:$8 sps:$4 sm:$0xff]   ;;  %v416_v29 = vld [vmem:[%s632_s3 + $0x30] ss:$8 sps:$4 sm:$0xff]   ;;  %v417_v30 = vld [vmem:[%s632_s3 + $0x24] ss:$8 sps:$4 sm:$0xff]   ;;  %v112_v5 = vlaneseq }
   0x6   :  { %29 = vadd.xlane.f32.xlu0 %v22_v2  ;;  %33 = vadd.xlane.f32.xlu1 %v24_v3  ;;  %v419_v32 = vld [vmem:[%s632_s3 + $0x20] ss:$8 sps:$4 sm:$0xff]   ;;  %v420_v33 = vld [vmem:[%s632_s3 + $0x14] ss:$8 sps:$4 sm:$0xff]   ;;  %v422_v34 = vld [vmem:[%s632_s3 + $0x10] ss:$8 sps:$4 sm:$0xff]  }
   0x7   :  { %204 = vmatprep.subr.bf16.mxu0 %v405_v22  ;;  %386 = vmatprep.subr.bf16.mxu1 %v405_v22  ;;  %v423_v35 = vld [vmem:[%s632_s3 + $0x4] ss:$8 sps:$4 sm:$0xff]   ;;  %v425_v36 = vld [vmem:[%s632_s3] ss:$8 sps:$4 sm:$0xff]  }
   0x8   :  { %v359_v51 = vld [vmem:[%s633_s1] ss:$0 sm:$0xff] }
   0x9   :  { %205 = vmatpush1.bf16.msra.mxu0 %v407_v23  ;;  %394 = vmatpush1.bf16.msra.mxu1 %v407_v23  ;;  %v360_v56 = vld [vmem:[%s634_s2] ss:$0 sm:$0xff] }
   0xa   :  { %206 = vmatprep.subr.bf16.mxu0 %v408_v24  ;;  %387 = vmatprep.subr.bf16.mxu1 %v408_v24 }
   0xd   :  { %207 = vmatpush1.bf16.msra.mxu0 %v410_v25  ;;  %395 = vmatpush1.bf16.msra.mxu1 %v410_v25 }
   0xe   :  { %208 = vmatprep.subr.bf16.mxu0 %v411_v26  ;;  %388 = vmatprep.subr.bf16.mxu1 %v411_v26 }
  0x11   :  { %209 = vmatpush1.bf16.msra.mxu0 %v413_v27  ;;  %396 = vmatpush1.bf16.msra.mxu1 %v413_v27 }
  0x12   :  { %210 = vmatprep.subr.bf16.mxu0 %v414_v28  ;;  %389 = vmatprep.subr.bf16.mxu1 %v414_v28 }
  0x15   :  { %211 = vmatpush1.bf16.msra.mxu0 %v416_v29  ;;  %397 = vmatpush1.bf16.msra.mxu1 %v416_v29 }
  0x16   :  { %212 = vmatprep.subr.bf16.mxu0 %v417_v30  ;;  %390 = vmatprep.subr.bf16.mxu1 %v417_v30 }
  0x19   :  { %213 = vmatpush1.bf16.msra.mxu0 %v419_v32  ;;  %398 = vmatpush1.bf16.msra.mxu1 %v419_v32 }
  0x1a   :  { %214 = vmatprep.subr.bf16.mxu0 %v420_v33  ;;  %391 = vmatprep.subr.bf16.mxu1 %v420_v33 }
  0x1d   :  { %215 = vmatpush1.bf16.msra.mxu0 %v422_v34  ;;  %399 = vmatpush1.bf16.msra.mxu1 %v422_v34 }
  0x1e   :  { %216 = vmatprep.subr.bf16.mxu0 %v423_v35  ;;  %392 = vmatprep.subr.bf16.mxu1 %v423_v35 }
  0x21   :  { %217 = vmatpush1.bf16.msra.mxu0 %v425_v36  ;;  %400 = vmatpush1.bf16.msra.mxu1 %v425_v36 }
  0x8b   :  { %v28_v6 = vpop.xlane.xlu0 %27  ;;  %v32_v7 = vpop.xlane.xlu1 %31 }
  0x8c   :  { %v36_v8 = vmul.f32 0.0078125, %v28_v6  ;;  %v38_v9 = vmul.f32 0.0078125, %v32_v7  ;;  %v113_v6 = vshrl.u32 %v112_v5, 7 }
  0x8e   :  { %v499_v10 = vsub.f32 %v21_v0, %v36_v8  ;;  %v501_v11 = vsub.f32 %v23_v1, %v38_v9  ;;  %v114_v7 = vsub.s32 0, %v113_v6  ;;  %v110_v8 = vld [vmem:[%s635_s4] sm:$0x3]  ;;  %v118_v9 = vsub.s32 1, %v113_v6 }
  0x8f   :  { %v30_v12 = vpop.xlane.xlu0 %29  ;;  %v34_v13 = vpop.xlane.xlu1 %33 }
  0x90   :  { %v37_v14 = vmul.f32 0.0078125, %v30_v12  ;;  %v44_v15 = vmul.f32 %v499_v10, %v499_v10  ;;  %v39_v16 = vmul.f32 0.0078125, %v34_v13  ;;  %v46_v19 = vmul.f32 %v501_v11, %v501_v11 }
  0x92   :  { %v505_v17 = vsub.f32 %v22_v2, %v37_v14  ;;  %48 = vadd.xlane.f32.xlu0 %v44_v15  ;;  %v507_v18 = vsub.f32 %v24_v3, %v39_v16 }
  0x94   :  { %v45_v20 = vmul.f32 %v505_v17, %v505_v17  ;;  %v47_v21 = vmul.f32 %v507_v18, %v507_v18 }
  0x96   :  { %52 = vadd.xlane.f32.xlu0 %v46_v19  ;;  %50 = vadd.xlane.f32.xlu1 %v45_v20 }
  0x9a   :  { %54 = vadd.xlane.f32.xlu1 %v47_v21 }
 0x11b   :  { %v49_v37 = vpop.xlane.xlu0 %48 }
 0x11c   :  { %v56_v38 = vmul.f32 0.0078125, %v49_v37 }
 0x11e   :  { %v60_v39 = vadd.f32 1e-05, %v56_v38 }
 0x11f   :  { %v51_v40 = vpop.xlane.xlu1 %50  ;;  %v53_v41 = vpop.xlane.xlu0 %52 }
 0x120   :  { %426 = vrsqrt.f32 %v60_v39  ;;  %v57_v42 = vmul.f32 0.0078125, %v51_v40  ;;  %v58_v43 = vmul.f32 0.0078125, %v53_v41 }
 0x122   :  { %v61_v44 = vadd.f32 1e-05, %v57_v42  ;;  %v62_v45 = vadd.f32 1e-05, %v58_v43 }
 0x123   :  { %v55_v46 = vpop.xlane.xlu1 %54 }
 0x124   :  { %428 = vrsqrt.f32 %v61_v44  ;;  %v59_v47 = vmul.f32 0.0078125, %v55_v46 }
 0x125   :  { %430 = vrsqrt.f32 %v62_v45 }
 0x126   :  { %v63_v48 = vadd.f32 1e-05, %v59_v47 }
 0x128   :  { %432 = vrsqrt.f32 %v63_v48 }
 0x12d   :  { %v427_v49 = vpop.eup %426 }
 0x12e   :  { %v68_v50 = vmul.f32 %v427_v49, %v499_v10  ;;  %v115_v10 = vrot.slane %v110_v8, %v114_v7 }
 0x130   :  { %v78_v55 = vmul.f32 %v359_v51, %v68_v50 }
 0x131   :  { %v429_v52 = vpop.eup %428 }
 0x132   :  { %v431_v53 = vpop.eup %430  ;;  %v69_v54 = vmul.f32 %v429_v52, %v505_v17  ;;  %v88_v60 = vadd.f32 %v360_v56, %v78_v55 }
 0x133   :  { %v70_v57 = vmul.f32 %v431_v53, %v501_v11  ;;  %v119_v11 = vrot.slane %v110_v8, %v118_v9 }
 0x134   :  { %v79_v58 = vmul.f32 %v359_v51, %v69_v54 }
 0x135   :  { %v433_v59 = vpop.eup %432  ;;  %v80_v63 = vmul.f32 %v359_v51, %v70_v57 }
 0x136   :  { %v89_v61 = vadd.f32 %v360_v56, %v79_v58  ;;  %v71_v62 = vmul.f32 %v433_v59, %v507_v18 }
 0x137   :  { %v90_v2 = vadd.f32 %v360_v56, %v80_v63 }
 0x138   :  { %v92_v0 = vpack.c.bf16 %v89_v61, %v88_v60  ;;  %v81_v1 = vmul.f32 %v359_v51, %v71_v62 }
 0x13a   :  { %235 = vmatmul.mubr.bf16.vlgmr.msra.gmra.mxu0 %v92_v0  ;;  %v91_v3 = vadd.f32 %v360_v56, %v81_v1 }
 0x13c   :  { %v93_v4 = vpack.c.bf16 %v91_v3, %v90_v2 }
 0x13e   :  { %245 = vmatmul.mubr.bf16.vlgmr.msra.gmra.mxu1 %v93_v4 }
 0x1fa   :  { %v236_v12 = vpop.f32.mrf.mxu0 }
 0x1fb   :  { %v570_v13 = vadd.f32 %v236_v12, %v115_v10 }
 0x1fc   :  { %v238_v14 = vpop.f32.mrf.mxu0 }
 0x1fd   :  { %v263_v15 = vmul.f32 0.044715, %v570_v13  ;;  %v573_v16 = vadd.f32 %v238_v14, %v119_v11  ;;  %v255_v7 = vmul.f32 0.5, %v570_v13 }
 0x1fe   :  { %v240_v17 = vpop.f32.mrf.mxu0  ;;  %v246_v18 = vpop.f32.mrf.mxu1 }
 0x1ff   :  { %v271_v19 = vmul.f32 %v263_v15, %v570_v13  ;;  %v264_v20 = vmul.f32 0.044715, %v573_v16  ;;  %v577_v21 = vadd.f32 %v240_v17, %v115_v10  ;;  %v579_v22 = vadd.f32 %v246_v18, %v115_v10 }
 0x200   :  { %v242_v23 = vpop.f32.mrf.mxu0  ;;  %v248_v24 = vpop.f32.mrf.mxu1  ;;  %v256_v8 = vmul.f32 0.5, %v573_v16 }
 0x201   :  { %v279_v25 = vmul.f32 %v271_v19, %v570_v13  ;;  %v272_v26 = vmul.f32 %v264_v20, %v573_v16  ;;  %v265_v27 = vmul.f32 0.044715, %v577_v21  ;;  %v267_v28 = vmul.f32 0.044715, %v579_v22 }
 0x202   :  { %v585_v29 = vadd.f32 %v242_v23, %v119_v11  ;;  %v587_v30 = vadd.f32 %v248_v24, %v119_v11  ;;  %v250_v31 = vpop.f32.mrf.mxu1  ;;  %v257_v23 = vmul.f32 0.5, %v577_v21 }
 0x203   :  { %v287_v32 = vadd.f32 %v279_v25, %v570_v13  ;;  %v280_v33 = vmul.f32 %v272_v26, %v573_v16  ;;  %v273_v34 = vmul.f32 %v265_v27, %v577_v21  ;;  %v592_v35 = vadd.f32 %v250_v31, %v115_v10 }
 0x204   :  { %v275_v36 = vmul.f32 %v267_v28, %v579_v22  ;;  %v266_v37 = vmul.f32 0.044715, %v585_v29  ;;  %v268_v41 = vmul.f32 0.044715, %v587_v30  ;;  %v252_v42 = vpop.f32.mrf.mxu1  ;;  %v258_v24 = vmul.f32 0.5, %v585_v29 }
 0x205   :  { %v295_v38 = vmul.f32 0.7978846, %v287_v32  ;;  %v288_v39 = vadd.f32 %v280_v33, %v573_v16  ;;  %v281_v40 = vmul.f32 %v273_v34, %v577_v21  ;;  %v269_v45 = vmul.f32 0.044715, %v592_v35 }
 0x206   :  { %v283_v43 = vmul.f32 %v275_v36, %v579_v22  ;;  %v274_v44 = vmul.f32 %v266_v37, %v585_v29  ;;  %v276_v48 = vmul.f32 %v268_v41, %v587_v30  ;;  %v253_v52 = vadd.f32 %v252_v42, %v119_v11 }
 0x207   :  { %434 = vtanh.f32 %v295_v38  ;;  %v296_v46 = vmul.f32 0.7978846, %v288_v39  ;;  %v289_v47 = vadd.f32 %v281_v40, %v577_v21  ;;  %v277_v51 = vmul.f32 %v269_v45, %v592_v35 }
 0x208   :  { %v291_v49 = vadd.f32 %v283_v43, %v579_v22  ;;  %v282_v50 = vmul.f32 %v274_v44, %v585_v29  ;;  %v284_v54 = vmul.f32 %v276_v48, %v587_v30  ;;  %v270_v59 = vmul.f32 0.044715, %v253_v52 }
 0x209   :  { %436 = vtanh.f32 %v296_v46  ;;  %v297_v53 = vmul.f32 0.7978846, %v289_v47  ;;  %v285_v57 = vmul.f32 %v277_v51, %v592_v35  ;;  %v259_v13 = vmul.f32 0.5, %v579_v22 }
 0x20a   :  { %v299_v55 = vmul.f32 0.7978846, %v291_v49  ;;  %v290_v56 = vadd.f32 %v282_v50, %v585_v29  ;;  %v292_v58 = vadd.f32 %v284_v54, %v587_v30  ;;  %v278_v63 = vmul.f32 %v270_v59, %v253_v52 }
 0x20b   :  { %438 = vtanh.f32 %v297_v53  ;;  %v293_v61 = vadd.f32 %v285_v57, %v592_v35  ;;  %v260_v16 = vmul.f32 0.5, %v587_v30  ;;  %v261_v22 = vmul.f32 0.5, %v592_v35 }
 0x20c   :  { %440 = vtanh.f32 %v299_v55  ;;  %v298_v60 = vmul.f32 0.7978846, %v290_v56  ;;  %v300_v62 = vmul.f32 0.7978846, %v292_v58  ;;  %v286_v1 = vmul.f32 %v278_v63, %v253_v52 }
 0x20d   :  { %v301_v0 = vmul.f32 0.7978846, %v293_v61  ;;  %v262_v29 = vmul.f32 0.5, %v253_v52 }
 0x20e   :  { %442 = vtanh.f32 %v298_v60  ;;  %v294_v2 = vadd.f32 %v286_v1, %v253_v52 }
 0x20f   :  { %444 = vtanh.f32 %v300_v62 }
 0x210   :  { %446 = vtanh.f32 %v301_v0  ;;  %v302_v3 = vmul.f32 0.7978846, %v294_v2 }
 0x212   :  { %448 = vtanh.f32 %v302_v3 }
 0x214   :  { %v435_v4 = vpop.eup %434 }
 0x215   :  { %v311_v5 = vadd.f32 1.0, %v435_v4 }
 0x216   :  { %v437_v6 = vpop.eup %436 }
 0x217   :  { %v312_v9 = vadd.f32 1.0, %v437_v6  ;;  %v319_v12 = vmul.f32 %v311_v5, %v255_v7 }
 0x218   :  { %v439_v10 = vpop.eup %438 }
 0x219   :  { %v441_v11 = vpop.eup %440  ;;  %v320_v14 = vmul.f32 %v312_v9, %v256_v8  ;;  %v313_v15 = vadd.f32 1.0, %v439_v10 }
 0x21a   :  { %v315_v19 = vadd.f32 1.0, %v441_v11 }
 0x21b   :  { %v443_v17 = vpop.eup %442  ;;  %v381_v18 = vpack.c.bf16 %v320_v14, %v319_v12  ;;  %v321_v28 = vmul.f32 %v313_v15, %v257_v23 }
 0x21c   :  { %v445_v20 = vpop.eup %444  ;;  %v314_v25 = vadd.f32 1.0, %v443_v17  ;;  %v323_v32 = vmul.f32 %v315_v19, %v259_v13 }
 0x21d   :  { %351 = vst [vmem:[%s636_s5] sm:$0xff] %v381_v18  ;;  %v316_v26 = vadd.f32 1.0, %v445_v20  ;;  %v447_v27 = vpop.eup %446 }
 0x21e   :  { %v322_v31 = vmul.f32 %v314_v25, %v258_v24  ;;  %v317_v21 = vadd.f32 1.0, %v447_v27 }
 0x21f   :  { %v324_v33 = vmul.f32 %v316_v26, %v260_v16  ;;  %v449_v37 = vpop.eup %448 }
 0x220   :  { %v382_v34 = vpack.c.bf16 %v322_v31, %v321_v28  ;;  %v318_v30 = vadd.f32 1.0, %v449_v37  ;;  %v325_v38 = vmul.f32 %v317_v21, %v261_v22 }
 0x221   :  { %v383_v36 = vpack.c.bf16 %v324_v33, %v323_v32 }
 0x222   :  { %352 = vst [vmem:[%s636_s5 + $0x8] sm:$0xff] %v382_v34  ;;  %v326_v39 = vmul.f32 %v318_v30, %v262_v29 }
 0x223   :  { %353 = vst [vmem:[%s636_s5 + $0x10] sm:$0xff] %v383_v36 }
 0x224   :  { %v384_v40 = vpack.c.bf16 %v326_v39, %v325_v38 }
 0x226   :  { %354 = vst [vmem:[%s636_s5 + $0x18] sm:$0xff] %v384_v40 }

// kernel: speech_tower_forward.17
= control target key start
LH: loop header
LB: loop body
LE: loop exit
PB: predicated region body
PF: predicated region fallthrough
CT: control target
= control target key end

     0   :  { %s307_s2 = inlined_call_operand.vmem [shape: bf16[128,128], index: 2, kind: input, shape index: {}]   ;;  %s308_s0 = inlined_call_operand.vmem [shape: bf16[32,128], index: 0, kind: input, shape index: {}]   ;;  %s309_s1 = inlined_call_operand.vmem [shape: f32[32,128], index: 1, kind: input, shape index: {}]   ;;  %s310_s3 = inlined_call_operand.vmem [shape: f32[1,128], index: 3, kind: input, shape index: {}]   ;;  %s311_s4 = inlined_call_operand.vmem [shape: f32[32,128], index: 4, kind: output, shape index: {}]  }
   0x1   :  { %v215_v0 = vld [vmem:[%s307_s2 + $0x38] sm:$0xff]   ;;  %v216_v1 = vld [vmem:[%s307_s2 + $0x30] sm:$0xff]   ;;  %v217_v2 = vld [vmem:[%s307_s2 + $0x28] sm:$0xff]  }
   0x2   :  { %195 = vmatprep.subr.bf16.mxu0 %v215_v0  ;;  %v218_v3 = vld [vmem:[%s307_s2 + $0x20] sm:$0xff]   ;;  %v219_v5 = vld [vmem:[%s307_s2 + $0x18] sm:$0xff]   ;;  %v220_v6 = vld [vmem:[%s307_s2 + $0x10] sm:$0xff]  }
   0x3   :  { %196 = vmatpush3.bf16.msra.mxu0 %v215_v0  ;;  %v223_v4 = vld [vmem:[%s308_s0] sm:$0xff]   ;;  %v221_v7 = vld [vmem:[%s307_s2 + $0x8] sm:$0xff]   ;;  %v149_v10 = vld [vmem:[%s309_s1 + $0x10] sm:$0xff] }
   0x4   :  { %197 = vmatprep.subr.bf16.mxu0 %v216_v1  ;;  %211 = vmatprep.mubr.bf16.mxu0 %v223_v4  ;;  %v222_v8 = vld [vmem:[%s307_s2] sm:$0xff]   ;;  %v224_v9 = vld [vmem:[%s308_s0 + $0x8] sm:$0xff]   ;;  %v150_v16 = vld [vmem:[%s309_s1 + $0x18] sm:$0xff] }
   0x5   :  { %v184_v12 = vld [vmem:[%s310_s3] ss:$0 sm:$0xff]  ;;  %v148_v20 = vld [vmem:[%s309_s1 + $0x8] sm:$0xff] }
   0x6   :  { %v147_v13 = vld [vmem:[%s309_s1] sm:$0xff] }
   0x7   :  { %198 = vmatpush3.bf16.msra.mxu0 %v216_v1 }
   0x8   :  { %199 = vmatprep.subr.bf16.mxu0 %v217_v2 }
   0xb   :  { %200 = vmatpush3.bf16.msra.mxu0 %v217_v2 }
   0xc   :  { %201 = vmatprep.subr.bf16.mxu0 %v218_v3 }
   0xf   :  { %202 = vmatpush3.bf16.msra.mxu0 %v218_v3 }
  0x10   :  { %203 = vmatprep.subr.bf16.mxu0 %v219_v5 }
  0x13   :  { %204 = vmatpush3.bf16.msra.mxu0 %v219_v5 }
  0x14   :  { %205 = vmatprep.subr.bf16.mxu0 %v220_v6 }
  0x17   :  { %206 = vmatpush3.bf16.msra.mxu0 %v220_v6 }
  0x18   :  { %207 = vmatprep.subr.bf16.mxu0 %v221_v7 }
  0x1b   :  { %208 = vmatpush3.bf16.msra.mxu0 %v221_v7 }
  0x1c   :  { %209 = vmatprep.subr.bf16.mxu0 %v222_v8 }
  0x1f   :  { %210 = vmatpush3.bf16.msra.mxu0 %v222_v8 }
  0x22   :  { %212 = vmatmul.mubr.bf16.vlgmr.msra.gmra.mxu0 %v224_v9 }
  0xe2   :  { %v213_v11 = vpop.f32.mrf.mxu0 }
  0xe3   :  { %v153_v14 = vadd.f32 %v213_v11, %v149_v10 }
  0xe4   :  { %v132_v15 = vpop.f32.mrf.mxu0 }
  0xe5   :  { %v164_v17 = vadd.f32 %v184_v12, %v153_v14  ;;  %v151_v18 = vadd.f32 %v147_v13, %v132_v15 }
  0xe6   :  { %v214_v19 = vpop.f32.mrf.mxu0 }
  0xe7   :  { %168 = vst [vmem:[%s311_s4 + $0x10] sm:$0xff] %v164_v17  ;;  %v162_v21 = vadd.f32 %v184_v12, %v151_v18  ;;  %v154_v22 = vadd.f32 %v214_v19, %v150_v16 }
  0xe8   :  { %v135_v23 = vpop.f32.mrf.mxu0 }
  0xe9   :  { %166 = vst [vmem:[%s311_s4] sm:$0xff] %v162_v21  ;;  %v165_v24 = vadd.f32 %v184_v12, %v154_v22  ;;  %v152_v25 = vadd.f32 %v148_v20, %v135_v23 }
  0xeb   :  { %169 = vst [vmem:[%s311_s4 + $0x18] sm:$0xff] %v165_v24  ;;  %v163_v26 = vadd.f32 %v184_v12, %v152_v25 }
  0xed   :  { %167 = vst [vmem:[%s311_s4 + $0x8] sm:$0xff] %v163_v26 }

// kernel: speech_tower_forward.19
= control target key start
LH: loop header
LB: loop body
LE: loop exit
PB: predicated region body
PF: predicated region fallthrough
CT: control target
= control target key end

     0   :  { %s445_s2 = inlined_call_operand.vmem [shape: bf16[256,128], index: 2, kind: input, shape index: {}]   ;;  %s446_s0 = inlined_call_operand.vmem [shape: bf16[32,256], index: 0, kind: input, shape index: {}]   ;;  %s447_s1 = inlined_call_operand.vmem [shape: f32[32,128], index: 1, kind: input, shape index: {}]   ;;  %s448_s3 = inlined_call_operand.vmem [shape: f32[1,128], index: 3, kind: input, shape index: {}]   ;;  %s449_s4 = inlined_call_operand.vmem [shape: f32[32,128], index: 4, kind: output, shape index: {}]  }
   0x1   :  { %v311_v0 = vld [vmem:[%s445_s2 + $0x78] sm:$0xff]   ;;  %v313_v2 = vld [vmem:[%s445_s2 + $0x70] sm:$0xff]   ;;  %v315_v4 = vld [vmem:[%s445_s2 + $0x68] sm:$0xff]  }
   0x2   :  { %v312_v1 = vld [vmem:[%s445_s2 + $0x38] sm:$0xff]   ;;  %267 = vmatprep.subr.bf16.mxu0 %v311_v0  ;;  %295 = vmatprep.subr.bf16.mxu1 %v311_v0  ;;  %v314_v3 = vld [vmem:[%s445_s2 + $0x30] sm:$0xff]   ;;  %v316_v5 = vld [vmem:[%s445_s2 + $0x28] sm:$0xff]  }
   0x3   :  { %268 = vmatpush3.bf16.msra.mxu0 %v312_v1  ;;  %303 = vmatpush3.bf16.msra.mxu1 %v312_v1  ;;  %v317_v6 = vld [vmem:[%s445_s2 + $0x60] sm:$0xff]   ;;  %v319_v8 = vld [vmem:[%s445_s2 + $0x58] sm:$0xff]   ;;  %v321_v10 = vld [vmem:[%s445_s2 + $0x50] sm:$0xff]  }
   0x4   :  { %269 = vmatprep.subr.bf16.mxu0 %v313_v2  ;;  %296 = vmatprep.subr.bf16.mxu1 %v313_v2  ;;  %v318_v7 = vld [vmem:[%s445_s2 + $0x20] sm:$0xff]   ;;  %v320_v9 = vld [vmem:[%s445_s2 + $0x18] sm:$0xff]   ;;  %v322_v13 = vld [vmem:[%s445_s2 + $0x10] sm:$0xff]  }
   0x5   :  { %v329_v11 = vld [vmem:[%s446_s0 + $0x4] ss:$8 sps:$4 sm:$0xff]   ;;  %v332_v12 = vld [vmem:[%s446_s0 + $0x14] ss:$8 sps:$4 sm:$0xff]   ;;  %v327_v18 = vld [vmem:[%s446_s0] ss:$8 sps:$4 sm:$0xff]  }
   0x6   :  { %v323_v14 = vld [vmem:[%s445_s2 + $0x48] sm:$0xff]   ;;  %202 = vmatprep.mubr.bf16.mxu0 %v329_v11  ;;  %210 = vmatprep.mubr.bf16.mxu1 %v332_v12  ;;  %v325_v16 = vld [vmem:[%s445_s2 + $0x40] sm:$0xff]   ;;  %v330_v19 = vld [vmem:[%s446_s0 + $0x10] ss:$8 sps:$4 sm:$0xff]  }
   0x7   :  { %270 = vmatpush3.bf16.msra.mxu0 %v314_v3  ;;  %304 = vmatpush3.bf16.msra.mxu1 %v314_v3  ;;  %v324_v15 = vld [vmem:[%s445_s2 + $0x8] sm:$0xff]   ;;  %v326_v17 = vld [vmem:[%s445_s2] sm:$0xff]   ;;  %v221_v25 = vld [vmem:[%s447_s1 + $0x10] sm:$0xff] }
   0x8   :  { %271 = vmatprep.subr.bf16.mxu0 %v315_v4  ;;  %297 = vmatprep.subr.bf16.mxu1 %v315_v4  ;;  %v219_v23 = vld [vmem:[%s447_s1] sm:$0xff]  ;;  %v220_v34 = vld [vmem:[%s447_s1 + $0x8] sm:$0xff]  ;;  %v222_v36 = vld [vmem:[%s447_s1 + $0x18] sm:$0xff] }
   0x9   :  { %v266_v28 = vld [vmem:[%s448_s3] ss:$0 sm:$0xff] }
   0xb   :  { %272 = vmatpush3.bf16.msra.mxu0 %v316_v5  ;;  %305 = vmatpush3.bf16.msra.mxu1 %v316_v5 }
   0xc   :  { %273 = vmatprep.subr.bf16.mxu0 %v317_v6  ;;  %298 = vmatprep.subr.bf16.mxu1 %v317_v6 }
   0xf   :  { %274 = vmatpush3.bf16.msra.mxu0 %v318_v7  ;;  %306 = vmatpush3.bf16.msra.mxu1 %v318_v7 }
  0x10   :  { %275 = vmatprep.subr.bf16.mxu0 %v319_v8  ;;  %299 = vmatprep.subr.bf16.mxu1 %v319_v8 }
  0x13   :  { %276 = vmatpush3.bf16.msra.mxu0 %v320_v9  ;;  %307 = vmatpush3.bf16.msra.mxu1 %v320_v9 }
  0x14   :  { %277 = vmatprep.subr.bf16.mxu0 %v321_v10  ;;  %300 = vmatprep.subr.bf16.mxu1 %v321_v10 }
  0x17   :  { %278 = vmatpush3.bf16.msra.mxu0 %v322_v13  ;;  %308 = vmatpush3.bf16.msra.mxu1 %v322_v13 }
  0x18   :  { %279 = vmatprep.subr.bf16.mxu0 %v323_v14  ;;  %301 = vmatprep.subr.bf16.mxu1 %v323_v14 }
  0x1b   :  { %280 = vmatpush3.bf16.msra.mxu0 %v324_v15  ;;  %309 = vmatpush3.bf16.msra.mxu1 %v324_v15 }
  0x1c   :  { %281 = vmatprep.subr.bf16.mxu0 %v325_v16  ;;  %302 = vmatprep.subr.bf16.mxu1 %v325_v16 }
  0x1f   :  { %282 = vmatpush3.bf16.msra.mxu0 %v326_v17  ;;  %310 = vmatpush3.bf16.msra.mxu1 %v326_v17 }
  0x22   :  { %203 = vmatmul.mubr.bf16.vlgmr.msra.gmra.mxu0 %v327_v18  ;;  %211 = vmatmul.mubr.bf16.vlgmr.msra.gmra.mxu1 %v330_v19 }
  0xe2   :  { %v283_v20 = vpop.f32.mrf.mxu0  ;;  %v289_v21 = vpop.f32.mrf.mxu1 }
  0xe4   :  { %v284_v22 = vpop.f32.mrf.mxu0  ;;  %v290_v24 = vpop.f32.mrf.mxu1 }
  0xe5   :  { %v285_v26 = vadd.f32 %v284_v22, %v283_v20  ;;  %v291_v27 = vadd.f32 %v290_v24, %v289_v21 }
  0xe6   :  { %v286_v29 = vpop.f32.mrf.mxu0  ;;  %v292_v30 = vpop.f32.mrf.mxu1 }
  0xe7   :  { %v223_v31 = vadd.f32 %v285_v26, %v219_v23  ;;  %v225_v32 = vadd.f32 %v291_v27, %v221_v25 }
  0xe8   :  { %v287_v33 = vpop.f32.mrf.mxu0  ;;  %v293_v35 = vpop.f32.mrf.mxu1 }
  0xe9   :  { %v234_v37 = vadd.f32 %v266_v28, %v223_v31  ;;  %v236_v38 = vadd.f32 %v266_v28, %v225_v32  ;;  %v288_v39 = vadd.f32 %v287_v33, %v286_v29  ;;  %v294_v40 = vadd.f32 %v293_v35, %v292_v30 }
  0xeb   :  { %238 = vst [vmem:[%s449_s4] sm:$0xff] %v234_v37  ;;  %240 = vst [vmem:[%s449_s4 + $0x10] sm:$0xff] %v236_v38  ;;  %v224_v41 = vadd.f32 %v288_v39, %v220_v34  ;;  %v226_v42 = vadd.f32 %v294_v40, %v222_v36 }
  0xed   :  { %v235_v43 = vadd.f32 %v266_v28, %v224_v41  ;;  %v237_v44 = vadd.f32 %v266_v28, %v226_v42 }
  0xef   :  { %239 = vst [vmem:[%s449_s4 + $0x8] sm:$0xff] %v235_v43  ;;  %241 = vst [vmem:[%s449_s4 + $0x18] sm:$0xff] %v237_v44 }

// kernel: speech_tower_forward.25
= control target key start
LH: loop header
LB: loop body
LE: loop exit
PB: predicated region body
PF: predicated region fallthrough
CT: control target
= control target key end

     0   :  { %s185_s0 = inlined_call_operand.vmem [shape: f32[32,128], index: 0, kind: input, shape index: {}]   ;;  %s186_s1 = inlined_call_operand.vmem [shape: f32[1,128], index: 1, kind: input, shape index: {}]   ;;  %s187_s2 = inlined_call_operand.vmem [shape: f32[1,128], index: 2, kind: input, shape index: {}]   ;;  %s188_s3 = inlined_call_operand.hbm [shape: f32[32,128], index: 3, kind: output, shape index: {}]  }
   0x1   :  { %v15_v0 = vld [vmem:[%s185_s0] sm:$0xff]  ;;  %v17_v1 = vld [vmem:[%s185_s0 + $0x10] sm:$0xff] }
   0x2   :  { %21 = vadd.xlane.f32.xlu0 %v15_v0  ;;  %25 = vadd.xlane.f32.xlu1 %v17_v1 }
   0x3   :  { %8 = vsyncpa [#allocation3], 0  ;;  %v16_v2 = vld [vmem:[%s185_s0 + $0x8] sm:$0xff]  ;;  %v18_v3 = vld [vmem:[%s185_s0 + $0x18] sm:$0xff]  ;;  %s141_s23 = smov [#allocation2]  }
   0x4   :  { %v106_v33 = vld [vmem:[%s186_s1] ss:$0 sm:$0xff]  ;;  %s95_s1 = sshll.u32 %s141_s23, 4  ;;  %s96_s1 = int_to_ptr.vmem [resolvable:$true] %s95_s1 }
   0x5   :  { %v107_v35 = vld [vmem:[%s187_s2] ss:$0 sm:$0xff]  ;;  %s119_s2 = scalar_lea.vmem %s96_s1, 512  ;;  %p124_p1 = scmp.lt.s32.totalorder %s96_s1, %s96_s1 }
   0x6   :  { %23 = vadd.xlane.f32.xlu0 %v16_v2  ;;  %27 = vadd.xlane.f32.xlu1 %v18_v3  ;;  %p120_p0 = scmp.ne.s32.totalorder %s96_s1, %s119_s2  ;;  %p125_p2 = scmp.lt.s32.totalorder %s119_s2, %s119_s2 }
   0x8   :  { %p126_p3 = por %p125_p2, %p124_p1 }
   0xa   :  { %p127_p4 = pnand %p126_p3, %p120_p0 }
  0x8b   :  { %v22_v4 = vpop.xlane.xlu0 %21  ;;  %v26_v5 = vpop.xlane.xlu1 %25 }
  0x8c   :  { %v30_v6 = vmul.f32 0.0078125, %v22_v4  ;;  %v32_v7 = vmul.f32 0.0078125, %v26_v5 }
  0x8e   :  { %v34_v8 = vsub.f32 %v15_v0, %v30_v6  ;;  %v36_v9 = vsub.f32 %v17_v1, %v32_v7 }
  0x8f   :  { %v24_v10 = vpop.xlane.xlu0 %23  ;;  %v28_v11 = vpop.xlane.xlu1 %27 }
  0x90   :  { %v31_v12 = vmul.f32 0.0078125, %v24_v10  ;;  %v38_v13 = vmul.f32 %v34_v8, %v34_v8  ;;  %v33_v14 = vmul.f32 0.0078125, %v28_v11  ;;  %v40_v17 = vmul.f32 %v36_v9, %v36_v9 }
  0x92   :  { %v35_v15 = vsub.f32 %v16_v2, %v31_v12  ;;  %42 = vadd.xlane.f32.xlu0 %v38_v13  ;;  %v37_v16 = vsub.f32 %v18_v3, %v33_v14 }
  0x94   :  { %v39_v18 = vmul.f32 %v35_v15, %v35_v15  ;;  %v41_v19 = vmul.f32 %v37_v16, %v37_v16 }
  0x96   :  { %46 = vadd.xlane.f32.xlu0 %v40_v17  ;;  %44 = vadd.xlane.f32.xlu1 %v39_v18 }
  0x9a   :  { %48 = vadd.xlane.f32.xlu1 %v41_v19 }
 0x11b   :  { %v43_v20 = vpop.xlane.xlu0 %42 }
 0x11c   :  { %v50_v21 = vmul.f32 0.0078125, %v43_v20 }
 0x11e   :  { %v54_v22 = vadd.f32 1e-05, %v50_v21 }
 0x11f   :  { %v45_v23 = vpop.xlane.xlu1 %44  ;;  %v47_v24 = vpop.xlane.xlu0 %46 }
 0x120   :  { %111 = vrsqrt.f32 %v54_v22  ;;  %v51_v25 = vmul.f32 0.0078125, %v45_v23  ;;  %v52_v26 = vmul.f32 0.0078125, %v47_v24 }
 0x122   :  { %v55_v27 = vadd.f32 1e-05, %v51_v25  ;;  %v56_v28 = vadd.f32 1e-05, %v52_v26 }
 0x123   :  { %v49_v29 = vpop.xlane.xlu1 %48 }
 0x124   :  { %113 = vrsqrt.f32 %v55_v27  ;;  %v53_v30 = vmul.f32 0.0078125, %v49_v29 }
 0x125   :  { %115 = vrsqrt.f32 %v56_v28 }
 0x126   :  { %v57_v31 = vadd.f32 1e-05, %v53_v30 }
 0x128   :  { %117 = vrsqrt.f32 %v57_v31 }
 0x12d   :  { %v112_v32 = vpop.eup %111 }
 0x12e   :  { %v62_v34 = vmul.f32 %v112_v32, %v34_v8 }
 0x130   :  { %v72_v36 = vmul.f32 %v106_v33, %v62_v34 }
 0x131   :  { %v114_v37 = vpop.eup %113 }
 0x132   :  { %v116_v38 = vpop.eup %115  ;;  %v63_v39 = vmul.f32 %v114_v37, %v35_v15  ;;  %v82_v40 = vadd.f32 %v107_v35, %v72_v36 }
 0x133   :  { %v64_v41 = vmul.f32 %v116_v38, %v36_v9 }
 0x134   :  { %v73_v42 = vmul.f32 %v106_v33, %v63_v39  ;;  %86 = vst [vmem:[#allocation2] sm:$0xff] %v82_v40 }
 0x135   :  { %v118_v43 = vpop.eup %117  ;;  %v74_v44 = vmul.f32 %v106_v33, %v64_v41 }
 0x136   :  { %v65_v45 = vmul.f32 %v118_v43, %v37_v16  ;;  %v83_v46 = vadd.f32 %v107_v35, %v73_v42 }
 0x137   :  { %v84_v47 = vadd.f32 %v107_v35, %v74_v44 }
 0x138   :  { %v75_v48 = vmul.f32 %v106_v33, %v65_v45  ;;  %87 = vst [vmem:[#allocation2 + $0x8] sm:$0xff] %v83_v46 }
 0x139   :  { %88 = vst [vmem:[#allocation2 + $0x10] sm:$0xff] %v84_v47 }
 0x13a   :  { %v85_v49 = vadd.f32 %v107_v35, %v75_v48 }
 0x13c   :  { %89 = vst [vmem:[#allocation2 + $0x18] sm:$0xff] %v85_v49 }
 0x13d   :  { %130 = shalt.err (!%p127_p4)
}
 0x13e   :  { %s142_s24 = smov 128   ;;  %s143_s25 = smov 8  }
 0x13f   :  { %101 = dma.vmem_to_hbm [thread:$0]  %s96_s1, 512, %s188_s3, [#allocation3], %s142_s24, %s142_s24, %s143_s25  }
 0x140   :  { %139 = dma.done.wait [#allocation3], 512  }
 0x141   :  { %140 = vsyncadd [#allocation3], 4294966784 }
 0x142   :  { %105 = vsyncpa [#allocation3], 1 }

</bundles_post_ra>
